<compile_context>
chip_gen: v7x
topology: tpu7x:2x2x1
jax: 0.10.0
libtpu: 0.0.40
codegen_flags: <defaults>
</compile_context>

<pallas_src>
import functools
import math

import jax
import jax.numpy as jnp
from jax import lax
from jax.experimental import pallas as pl
from jax.experimental.pallas import tpu as pltpu

EPS = 1e-6                         # timm.models.convnext.LayerNorm2d default eps
SQRT_2_OVER_PI = 0.7978845608028654


def autopad(k, p, d=1):
    ke = d * (k - 1) + 1
    return ke // 2 if p is None else p


def _round_up(a, b):
    return -(-a // b) * b


def _cna_kernel(x_ref, w_ref, g_ref, b_ref, o_ref, *, k, s, d, th, wo):
    """Fused conv (one K=k*k*C1 matmul) + channel LayerNorm + tanh GELU.

    x_ref: (Hp, Wp, C1)    zero-padded NHWC image of the current batch element
    w_ref: (C2, k*k*C1)    bf16 matmul weights, K ordered as (ki, kj, c)
    g_ref, b_ref: (C2, 1)  LayerNorm affine parameters
    o_ref: (C2, th*wo)     channel-major, lane-dense output tile
    """
    C2 = o_ref.shape[0]
    C1 = x_ref.shape[-1]

    row0 = pl.program_id(1) * th                    # first output row of tile
    h0 = pl.multiple_of(row0 * s, th * s)           # aligned dynamic-start hint

    # Patch assembly: stack the k*k tap slices along the channel (lane) axis.
    taps = []
    for t in range(k * k):                          # static unroll over taps
        ki, kj = divmod(t, k)
        if s == 1:
            xs = x_ref[pl.ds(h0 + ki * d, th), kj * d:kj * d + wo, :]
        else:                                       # strided taps (s > 1)
            xs = x_ref[pl.ds(h0 + ki * d, th, s), pl.ds(kj * d, wo, s), :]
        taps.append(xs)
    patches = jnp.concatenate(taps, axis=-1)        # (th, wo, k*k*C1)
    # wo % 8 == 0 (wrapper guarantees) -> this merge is layout-preserving.
    patches = patches.reshape(th * wo, k * k * C1).astype(jnp.bfloat16)

    # One fused MXU matmul, channel-major result: (C2, K) x (M, K)^T -> (C2, M).
    acc = lax.dot_general(w_ref[...], patches,
                          dimension_numbers=(((1,), (1,)), ((), ())),
                          preferred_element_type=jnp.float32)

    # LayerNorm over channels (sublane axis), two-pass variance.
    inv_c = 1.0 / C2
    mean = jnp.sum(acc, axis=0, keepdims=True) * inv_c          # (1, M)
    xc = acc - mean
    var = jnp.sum(xc * xc, axis=0, keepdims=True) * inv_c       # (1, M)
    yn = xc * lax.rsqrt(var + EPS)
    yn = yn * g_ref[...] + b_ref[...]                           # (C2,1) bcast

    # tanh GELU: the transcendental goes to the otherwise-idle EUP slot.
    out = 0.5 * yn * (1.0 + jnp.tanh(SQRT_2_OVER_PI *
                                     (yn + 0.044715 * yn * yn * yn)))
    o_ref[...] = out.astype(o_ref.dtype)


def cna_forward(x, weight, gamma, beta, *, k=1, s=1, p=None, d=1, g=1,
                target_rows=1024):
    """x: (N, C1, H, W) f32, weight: (C2, C1, k, k) OIHW, gamma/beta: (C2,)."""
    assert g == 1, "TODO(synk): grouped convolution (g > 1) not implemented"
    N, C1, H, W = x.shape
    C2 = weight.shape[0]
    pad = autopad(k, p, d)
    ke = d * (k - 1) + 1
    Ho = (H + 2 * pad - ke) // s + 1
    Wo = (W + 2 * pad - ke) // s + 1

    # --- tile geometry --------------------------------------------------------
    # wo_pad % 8 == 0 keeps the in-kernel (th, wo, K)->(th*wo, K) merge free;
    # th multiple of `unit` keeps th*wo_pad % 128 == 0 -> unmasked lane-dense
    # stores. Ragged Ho/Wo are padded (not divisor-searched) to avoid the
    # th=1 perf cliff at prime spatial sizes.
    wo_pad = _round_up(Wo, 8)
    unit = 128 // math.gcd(wo_pad, 128)
    th = max(unit, (max(target_rows, wo_pad) // wo_pad) // unit * unit)
    th = min(th, _round_up(Ho, unit))               # don't overshoot the image
    ho_pad = _round_up(Ho, th)
    grid_h = ho_pad // th

    # --- layout glue (one cheap HBM pass over the small input) ---------------
    # NCHW -> NHWC + zero pad; extra bottom/right zeros keep the padded output
    # tiles' reads in bounds (their results are sliced away below).
    hp = max(H + 2 * pad, (ho_pad - 1) * s + ke)
    wp = max(W + 2 * pad, (wo_pad - 1) * s + ke)
    xp = jnp.pad(jnp.transpose(x, (0, 2, 3, 1)),
                 ((0, 0), (pad, hp - H - pad), (pad, wp - W - pad), (0, 0)))

    # OIHW -> (C2, k*k*C1) bf16, K ordered (ki, kj, c) to match the kernel.
    w2 = jnp.transpose(weight, (0, 2, 3, 1)).reshape(C2, k * k * C1)
    w2 = w2.astype(jnp.bfloat16)

    # --- VMEM budget (double-buffered blocks + slack for intermediates) ------
    x_blk = hp * _round_up(wp, 8) * _round_up(C1, 128) * 4
    w_blk = _round_up(C2, 16) * _round_up(k * k * C1, 128) * 2
    o_blk = _round_up(C2, 8) * _round_up(th * wo_pad, 128) * 4
    vmem_limit = min(max(2 * (x_blk + w_blk + o_blk) + (16 << 20), 32 << 20),
                     56 << 20)

    out = pl.pallas_call(
        functools.partial(_cna_kernel, k=k, s=s, d=d, th=th, wo=wo_pad),
        out_shape=jax.ShapeDtypeStruct((N, C2, ho_pad * wo_pad), x.dtype),
        grid_spec=pltpu.PrefetchScalarGridSpec(
            num_scalar_prefetch=0,
            grid=(N, grid_h),
            in_specs=[
                # Whole padded image resident per batch element; block index is
                # independent of h, so it is DMA'd once per n and re-used.
                pl.BlockSpec((None, hp, wp, C1), lambda n, h: (n, 0, 0, 0)),
                pl.BlockSpec((C2, k * k * C1), lambda n, h: (0, 0)),
                pl.BlockSpec((C2, 1), lambda n, h: (0, 0)),
                pl.BlockSpec((C2, 1), lambda n, h: (0, 0)),
            ],
            out_specs=pl.BlockSpec((None, C2, th * wo_pad),
                                   lambda n, h: (n, 0, h)),
        ),
        compiler_params=pltpu.CompilerParams(
            dimension_semantics=("parallel", "parallel"),
            vmem_limit_bytes=vmem_limit),
    )(xp, w2, gamma.reshape(C2, 1), beta.reshape(C2, 1))

    # Channel-major flat output -> (N, C2, Ho, Wo): reshape + slice only, the
    # old full NHWC->NCHW HBM transpose of the output is gone.
    return out.reshape(N, C2, ho_pad, wo_pad)[:, :, :Ho, :Wo]


def _reference(x, weight, gamma, beta, *, k, s, p, d):
    pad = autopad(k, p, d)
    y = lax.conv_general_dilated(
        x, weight, window_strides=(s, s), padding=[(pad, pad), (pad, pad)],
        rhs_dilation=(d, d), dimension_numbers=("NCHW", "OIHW", "NCHW"),
        precision=lax.Precision.HIGHEST)
    # timm LayerNorm2d: LayerNorm over the channel dim, per spatial location.
    mean = jnp.mean(y, axis=1, keepdims=True)
    var = jnp.mean(jnp.square(y - mean), axis=1, keepdims=True)
    yn = (y - mean) * lax.rsqrt(var + EPS)
    yn = yn * gamma[None, :, None, None] + beta[None, :, None, None]
    return jax.nn.gelu(yn, approximate=False)       # nn.GELU default (erf)


if __name__ == "__main__":
    # CNA(c1=4, c2=32, k=3, s=1, p=None, g=1, d=1, act=GELU, norm=LayerNorm2d)
    N, C1, C2, H, W, k, s, d = 2, 4, 32, 16, 16, 3, 1, 1

    key = jax.random.PRNGKey(0)
    kx, kw = jax.random.split(key)
    x = jax.random.normal(kx, (N, C1, H, W), dtype=jnp.float32)
    weight = jax.random.normal(kw, (C2, C1, k, k), dtype=jnp.float32) * 0.1
    gamma = jnp.ones((C2,), dtype=jnp.float32)      # nn.LayerNorm default init
    beta = jnp.zeros((C2,), dtype=jnp.float32)

    fwd = jax.jit(functools.partial(cna_forward, k=k, s=s, p=None, d=d))
    out = jax.block_until_ready(fwd(x, weight, gamma, beta))

    ref = _reference(x, weight, gamma, beta, k=k, s=s, p=None, d=d)
    assert out.shape == (N, C2, H, W), out.shape
    err = float(jnp.max(jnp.abs(out - ref)))
    # Kernel matmul is single-pass bf16 MXU and GELU is the tanh approximation
    # (both per the perf review); reference is f32 HIGHEST + erf GELU, so allow
    # bf16-class tolerance.
    assert jnp.allclose(out, ref, rtol=2e-2, atol=3e-2), err
    print("KERNEL_OK")
</pallas_src>

<mosaic_0001>
module attributes {stable_mosaic.version = 11 : i64} {
  func.func @_cna_kernel(%arg0: i32, %arg1: i32, %arg2: memref<1x18x18x4xf32, #tpu.memory_space<vmem>>, %arg3: memref<32x36xbf16, #tpu.memory_space<vmem>>, %arg4: memref<32x1xf32, #tpu.memory_space<vmem>>, %arg5: memref<32x1xf32, #tpu.memory_space<vmem>>, %arg6: memref<1x32x256xf32, #tpu.memory_space<vmem>>) attributes {dimension_semantics = [#tpu.dimension_semantics<parallel>, #tpu.dimension_semantics<parallel>], iteration_bounds = array<i64: 2, 1>, scalar_prefetch = 0 : i64, scratch_operands = 0 : i64, tpu.core_type = #tpu.core_type<tc>, window_params = [{transform_indices = @transform_0, window_bounds = array<i64: 1, 18, 18, 4>}, {pipeline_mode = #tpu.pipeline_mode<synchronous>, transform_indices = @transform_1, window_bounds = array<i64: 32, 36>}, {pipeline_mode = #tpu.pipeline_mode<synchronous>, transform_indices = @transform_2, window_bounds = array<i64: 32, 1>}, {pipeline_mode = #tpu.pipeline_mode<synchronous>, transform_indices = @transform_3, window_bounds = array<i64: 32, 1>}, {transform_indices = @transform_4, window_bounds = array<i64: 1, 32, 256>}]} {
    %c16_i32 = arith.constant 16 : i32
    %0 = arith.muli %arg1, %c16_i32 : i32
    %c1_i32 = arith.constant 1 : i32
    %1 = arith.muli %0, %c1_i32 : i32
    %2 = tpu.assume_multiple %1, 16 : i32
    %c0_i32 = arith.constant 0 : i32
    %3 = arith.addi %2, %c0_i32 : i32
    %c0 = arith.constant 0 : index
    %4 = arith.index_cast %3 : i32 to index
    %c0_0 = arith.constant 0 : index
    %c0_1 = arith.constant 0 : index
    %5 = vector.load %arg2[%c0, %4, %c0_0, %c0_1] : memref<1x18x18x4xf32, #tpu.memory_space<vmem>>, vector<1x16x16x4xf32>
    %6 = vector.shape_cast %5 : vector<1x16x16x4xf32> to vector<16x16x4xf32>
    %c0_i32_2 = arith.constant 0 : i32
    %7 = arith.addi %2, %c0_i32_2 : i32
    %c0_3 = arith.constant 0 : index
    %8 = arith.index_cast %7 : i32 to index
    %c1 = arith.constant 1 : index
    %c0_4 = arith.constant 0 : index
    %9 = vector.load %arg2[%c0_3, %8, %c1, %c0_4] : memref<1x18x18x4xf32, #tpu.memory_space<vmem>>, vector<1x16x16x4xf32>
    %10 = vector.shape_cast %9 : vector<1x16x16x4xf32> to vector<16x16x4xf32>
    %c0_i32_5 = arith.constant 0 : i32
    %11 = arith.addi %2, %c0_i32_5 : i32
    %c0_6 = arith.constant 0 : index
    %12 = arith.index_cast %11 : i32 to index
    %c2 = arith.constant 2 : index
    %c0_7 = arith.constant 0 : index
    %13 = vector.load %arg2[%c0_6, %12, %c2, %c0_7] : memref<1x18x18x4xf32, #tpu.memory_space<vmem>>, vector<1x16x16x4xf32>
    %14 = vector.shape_cast %13 : vector<1x16x16x4xf32> to vector<16x16x4xf32>
    %c1_i32_8 = arith.constant 1 : i32
    %15 = arith.addi %2, %c1_i32_8 : i32
    %c0_9 = arith.constant 0 : index
    %16 = arith.index_cast %15 : i32 to index
    %c0_10 = arith.constant 0 : index
    %c0_11 = arith.constant 0 : index
    %17 = vector.load %arg2[%c0_9, %16, %c0_10, %c0_11] : memref<1x18x18x4xf32, #tpu.memory_space<vmem>>, vector<1x16x16x4xf32>
    %18 = vector.shape_cast %17 : vector<1x16x16x4xf32> to vector<16x16x4xf32>
    %c1_i32_12 = arith.constant 1 : i32
    %19 = arith.addi %2, %c1_i32_12 : i32
    %c0_13 = arith.constant 0 : index
    %20 = arith.index_cast %19 : i32 to index
    %c1_14 = arith.constant 1 : index
    %c0_15 = arith.constant 0 : index
    %21 = vector.load %arg2[%c0_13, %20, %c1_14, %c0_15] : memref<1x18x18x4xf32, #tpu.memory_space<vmem>>, vector<1x16x16x4xf32>
    %22 = vector.shape_cast %21 : vector<1x16x16x4xf32> to vector<16x16x4xf32>
    %c1_i32_16 = arith.constant 1 : i32
    %23 = arith.addi %2, %c1_i32_16 : i32
    %c0_17 = arith.constant 0 : index
    %24 = arith.index_cast %23 : i32 to index
    %c2_18 = arith.constant 2 : index
    %c0_19 = arith.constant 0 : index
    %25 = vector.load %arg2[%c0_17, %24, %c2_18, %c0_19] : memref<1x18x18x4xf32, #tpu.memory_space<vmem>>, vector<1x16x16x4xf32>
    %26 = vector.shape_cast %25 : vector<1x16x16x4xf32> to vector<16x16x4xf32>
    %c2_i32 = arith.constant 2 : i32
    %27 = arith.addi %2, %c2_i32 : i32
    %c0_20 = arith.constant 0 : index
    %28 = arith.index_cast %27 : i32 to index
    %c0_21 = arith.constant 0 : index
    %c0_22 = arith.constant 0 : index
    %29 = vector.load %arg2[%c0_20, %28, %c0_21, %c0_22] : memref<1x18x18x4xf32, #tpu.memory_space<vmem>>, vector<1x16x16x4xf32>
    %30 = vector.shape_cast %29 : vector<1x16x16x4xf32> to vector<16x16x4xf32>
    %c2_i32_23 = arith.constant 2 : i32
    %31 = arith.addi %2, %c2_i32_23 : i32
    %c0_24 = arith.constant 0 : index
    %32 = arith.index_cast %31 : i32 to index
    %c1_25 = arith.constant 1 : index
    %c0_26 = arith.constant 0 : index
    %33 = vector.load %arg2[%c0_24, %32, %c1_25, %c0_26] : memref<1x18x18x4xf32, #tpu.memory_space<vmem>>, vector<1x16x16x4xf32>
    %34 = vector.shape_cast %33 : vector<1x16x16x4xf32> to vector<16x16x4xf32>
    %c2_i32_27 = arith.constant 2 : i32
    %35 = arith.addi %2, %c2_i32_27 : i32
    %c0_28 = arith.constant 0 : index
    %36 = arith.index_cast %35 : i32 to index
    %c2_29 = arith.constant 2 : index
    %c0_30 = arith.constant 0 : index
    %37 = vector.load %arg2[%c0_28, %36, %c2_29, %c0_30] : memref<1x18x18x4xf32, #tpu.memory_space<vmem>>, vector<1x16x16x4xf32>
    %38 = vector.shape_cast %37 : vector<1x16x16x4xf32> to vector<16x16x4xf32>
    %39 = tpu.concatenate %6, %10, %14, %18, %22, %26, %30, %34, %38 in 2 : vector<16x16x4xf32>, vector<16x16x4xf32>, vector<16x16x4xf32>, vector<16x16x4xf32>, vector<16x16x4xf32>, vector<16x16x4xf32>, vector<16x16x4xf32>, vector<16x16x4xf32>, vector<16x16x4xf32> -> vector<16x16x36xf32>
    %40 = vector.shape_cast %39 : vector<16x16x36xf32> to vector<256x36xf32>
    %41 = arith.truncf %40 : vector<256x36xf32> to vector<256x36xbf16>
    %c0_31 = arith.constant 0 : index
    %c0_32 = arith.constant 0 : index
    %42 = vector.load %arg3[%c0_31, %c0_32] : memref<32x36xbf16, #tpu.memory_space<vmem>>, vector<32x36xbf16>
    %cst = arith.constant dense<0.000000e+00> : vector<32x256xf32>
    %43 = tpu.matmul %42, %41, %cst {dimension_numbers = #tpu.dot_dimension_numbers<[1], [1], [0], [0], [0, 0, 1, 0], [], []>} : vector<32x36xbf16>, vector<256x36xbf16>, vector<32x256xf32> -> vector<32x256xf32>
    %cst_33 = arith.constant dense<0.000000e+00> : vector<256xf32>
    %44 = vector.multi_reduction <add>, %43, %cst_33 [0] : vector<32x256xf32> to vector<256xf32>
    %45 = vector.shape_cast %44 : vector<256xf32> to vector<1x256xf32>
    %cst_34 = arith.constant 3.125000e-02 : f32
    %46 = vector.broadcast %cst_34 : f32 to vector<1x256xf32>
    %47 = arith.mulf %45, %46 : vector<1x256xf32>
    %48 = vector.broadcast %47 : vector<1x256xf32> to vector<32x256xf32>
    %49 = arith.subf %43, %48 : vector<32x256xf32>
    %50 = arith.mulf %49, %49 : vector<32x256xf32>
    %cst_35 = arith.constant dense<0.000000e+00> : vector<256xf32>
    %51 = vector.multi_reduction <add>, %50, %cst_35 [0] : vector<32x256xf32> to vector<256xf32>
    %52 = vector.shape_cast %51 : vector<256xf32> to vector<1x256xf32>
    %cst_36 = arith.constant 3.125000e-02 : f32
    %53 = vector.broadcast %cst_36 : f32 to vector<1x256xf32>
    %54 = arith.mulf %52, %53 : vector<1x256xf32>
    %cst_37 = arith.constant 9.99999997E-7 : f32
    %55 = vector.broadcast %cst_37 : f32 to vector<1x256xf32>
    %56 = arith.addf %54, %55 : vector<1x256xf32>
    %57 = math.rsqrt %56 : vector<1x256xf32>
    %58 = vector.broadcast %57 : vector<1x256xf32> to vector<32x256xf32>
    %59 = arith.mulf %49, %58 : vector<32x256xf32>
    %c0_38 = arith.constant 0 : index
    %c0_39 = arith.constant 0 : index
    %60 = vector.load %arg4[%c0_38, %c0_39] : memref<32x1xf32, #tpu.memory_space<vmem>>, vector<32x1xf32>
    %61 = vector.broadcast %60 : vector<32x1xf32> to vector<32x256xf32>
    %62 = arith.mulf %59, %61 : vector<32x256xf32>
    %c0_40 = arith.constant 0 : index
    %c0_41 = arith.constant 0 : index
    %63 = vector.load %arg5[%c0_40, %c0_41] : memref<32x1xf32, #tpu.memory_space<vmem>>, vector<32x1xf32>
    %64 = vector.broadcast %63 : vector<32x1xf32> to vector<32x256xf32>
    %65 = arith.addf %62, %64 : vector<32x256xf32>
    %cst_42 = arith.constant 5.000000e-01 : f32
    %66 = vector.broadcast %cst_42 : f32 to vector<32x256xf32>
    %67 = arith.mulf %66, %65 : vector<32x256xf32>
    %cst_43 = arith.constant 4.471500e-02 : f32
    %68 = vector.broadcast %cst_43 : f32 to vector<32x256xf32>
    %69 = arith.mulf %68, %65 : vector<32x256xf32>
    %70 = arith.mulf %69, %65 : vector<32x256xf32>
    %71 = arith.mulf %70, %65 : vector<32x256xf32>
    %72 = arith.addf %65, %71 : vector<32x256xf32>
    %cst_44 = arith.constant 0.797884583 : f32
    %73 = vector.broadcast %cst_44 : f32 to vector<32x256xf32>
    %74 = arith.mulf %73, %72 : vector<32x256xf32>
    %75 = math.tanh %74 : vector<32x256xf32>
    %cst_45 = arith.constant 1.000000e+00 : f32
    %76 = vector.broadcast %cst_45 : f32 to vector<32x256xf32>
    %77 = arith.addf %76, %75 : vector<32x256xf32>
    %78 = arith.mulf %67, %77 : vector<32x256xf32>
    %c0_46 = arith.constant 0 : index
    %c0_47 = arith.constant 0 : index
    %c0_48 = arith.constant 0 : index
    %79 = vector.load %arg6[%c0_46, %c0_47, %c0_48] : memref<1x32x256xf32, #tpu.memory_space<vmem>>, vector<1x32x256xf32>
    %80 = vector.shape_cast %79 : vector<1x32x256xf32> to vector<32x256xf32>
    %81 = vector.shape_cast %78 : vector<32x256xf32> to vector<1x32x256xf32>
    tpu.vector_store %arg6[%c0_46, %c0_47, %c0_48], %81 {strides = array<i32>} : memref<1x32x256xf32, #tpu.memory_space<vmem>>, vector<1x32x256xf32>,
    return
  }
  func.func @transform_0(%arg0: i32, %arg1: i32) -> (i32, i32, i32, i32) {
    %c0_i32 = arith.constant 0 : i32
    %c0_i32_0 = arith.constant 0 : i32
    %c0_i32_1 = arith.constant 0 : i32
    %c0_i32_2 = arith.constant 0 : i32
    return %arg0, %c0_i32, %c0_i32_0, %c0_i32_1 : i32, i32, i32, i32
  }
  func.func @transform_1(%arg0: i32, %arg1: i32) -> (i32, i32) {
    %c0_i32 = arith.constant 0 : i32
    %c0_i32_0 = arith.constant 0 : i32
    %c0_i32_1 = arith.constant 0 : i32
    return %c0_i32, %c0_i32_0 : i32, i32
  }
  func.func @transform_2(%arg0: i32, %arg1: i32) -> (i32, i32) {
    %c0_i32 = arith.constant 0 : i32
    %c0_i32_0 = arith.constant 0 : i32
    %c0_i32_1 = arith.constant 0 : i32
    return %c0_i32, %c0_i32_0 : i32, i32
  }
  func.func @transform_3(%arg0: i32, %arg1: i32) -> (i32, i32) {
    %c0_i32 = arith.constant 0 : i32
    %c0_i32_0 = arith.constant 0 : i32
    %c0_i32_1 = arith.constant 0 : i32
    return %c0_i32, %c0_i32_0 : i32, i32
  }
  func.func @transform_4(%arg0: i32, %arg1: i32) -> (i32, i32, i32) {
    %c0_i32 = arith.constant 0 : i32
    %c0_i32_0 = arith.constant 0 : i32
    return %arg0, %c0_i32, %arg1 : i32, i32, i32
  }
}

</mosaic_0001>

<bundles_post_ra>
// kernel: cna_forward.1
= control target key start
LH: loop header
LB: loop body
LE: loop exit
PB: predicated region body
PF: predicated region fallthrough
CT: control target
= control target key end

     0   :  { %s3279_s15 = smov 0   ;;  %s3281_s16 = smov 0   ;;  %s4355_s0 = inlined_call_operand.vmem [shape: f32[2,18,18,4], index: 0, kind: input, shape index: {}]   ;;  %s4356_s1 = inlined_call_operand.vmem [shape: bf16[32,36], index: 1, kind: input, shape index: {}]   ;;  %s4357_s2 = inlined_call_operand.vmem [shape: f32[32,1], index: 2, kind: input, shape index: {}]   ;;  %s4358_s3 = inlined_call_operand.vmem [shape: f32[32,1], index: 3, kind: input, shape index: {}]   ;;  %s4359_s4 = inlined_call_operand.vmem [shape: f32[2,32,256], index: 4, kind: output, shape index: {}]  }
   0x1   :  { %s3283_s17 = smov 0  }
   0x2 LB: > { %s26_s18 = sadd.s32 1, %s3239_s16  ;;  %p2252_p0 = scmp.ge.s32.totalorder %s3243_s17, 1  ;;  %s3243_s17 = sphi %s3283_s17, %s14_s17   ;;  %s3239_s16 = sphi %s3281_s16, %s4401_s16   ;;  %s3235_s15 = sphi %s3279_s15, %s4400_s15  }
   0x3   : > { %p28_p1 = scmp.ge.s32.totalorder %s26_s18, 2  ;;  %p176_p2 = scmp.lt.s32.totalorder %s3243_s17, 3 }
   0x5   : > { %s4403_s18 = smov (%p28_p1, %s26_s18), 0  ;;  %p177_p3 = pnand %p2252_p0, %p176_p2 }
   0x7   : > { %180 = sbr.rel (%p177_p3) target bundleno = 714 (0x2ca), region = 36 }
   0xe   : > { %p206_p4 = scmp.lt.s32.totalorder %s3235_s15, 1  ;;  %s3245_s23 = smov 4   ;;  %vm1543_vm0 = vcmask 31744   ;;  %vm1576_vm1 = vcmask 64512   ;;  %vm1609_vm2 = vcmask 97280   ;;  %vm1642_vm3 = vcmask 130048  }
   0xf   : > { %s3246_s24 = smov 8   ;;  %s3247_s25 = smov 12   ;;  %vm1675_vm4 = vcmask 162816   ;;  %vm1708_vm5 = vcmask 195584   ;;  %vm1741_vm6 = vcmask 228352   ;;  %vm1774_vm7 = vcmask 261120  }
  0x10   : > { %s4405_s15 = smov (!%p206_p4, %s3235_s15), 1  ;;  %s3248_s26 = smov 16   ;;  %vm1837_vm8 = vcmask 293888  }
  0x11   : > { %s2507_s19 = smul.u32 432, %s4405_s15  ;;  %s3249_s27 = smov 20  }
  0x12   : > { %s3250_s28 = smov 24   ;;  %s3251_s29 = smov 28  }
  0x13   : > { %s3303_s22 = scalar_lea.vmem %s4355_s0, %s2507_s19  ;;  %s3252_s30 = smov 32  }
  0x14   : > { %v261_v0 = vld [vmem:[%s3303_s22 + $0x31] sm:$0xff]  ;;  %v262_v1 = vld [vmem:[%s3303_s22 + $0x39] sm:$0xff]  ;;  %v257_v2 = vld [vmem:[%s3303_s22 + $0x1] sm:$0xff] }
  0x15   : > { %v3308_v3 = vpack.i.bf16 %v262_v1, %v261_v0  ;;  %v258_v4 = vld [vmem:[%s3303_s22 + $0x9] sm:$0xff]  ;;  %v264_v6 = vld [vmem:[%s3303_s22 + $0x51] sm:$0xff]  ;;  %v259_v8 = vld [vmem:[%s3303_s22 + $0x19] sm:$0xff] }
  0x16   : > { %v263_v5 = vld [vmem:[%s3303_s22 + $0x49] sm:$0xff]  ;;  %v2541_v7 = vpack.i.bf16 %v258_v4, %v257_v2  ;;  %v260_v9 = vld [vmem:[%s3303_s22 + $0x21] sm:$0xff]  ;;  %v267_v12 = vld [vmem:[%s3303_s22 + $0x79] sm:$0xff] }
  0x17   : > { %2552 = vrot.lane.b32.xlu1 %v3308_v3, %s3245_s23  ;;  %v3317_v10 = vpack.i.bf16 %v264_v6, %v263_v5  ;;  %v3320_v11 = vpack.i.bf16 %v260_v9, %v259_v8  ;;  %v268_v13 = vld [vmem:[%s3303_s22 + $0x81] sm:$0xff]  ;;  %v266_v15 = vld [vmem:[%s3303_s22 + $0x69] sm:$0xff]  ;;  %v272_v19 = vld [vmem:[%s3303_s22 + $0xb1] sm:$0xff] }
  0x18   : > { %2542 = vrot.lane.b32.xlu0 %v2541_v7, %s3245_s23  ;;  %v265_v14 = vld [vmem:[%s3303_s22 + $0x61] sm:$0xff]  ;;  %v3328_v16 = vpack.i.bf16 %v268_v13, %v267_v12  ;;  %v271_v18 = vld [vmem:[%s3303_s22 + $0xa9] sm:$0xff]  ;;  %v269_v20 = vld [vmem:[%s3303_s22 + $0x91] sm:$0xff] }
  0x19   : > { %v3332_v17 = vpack.i.bf16 %v266_v15, %v265_v14  ;;  %v270_v21 = vld [vmem:[%s3303_s22 + $0x99] sm:$0xff]  ;;  %v2576_v22 = vpack.i.bf16 %v272_v19, %v271_v18  ;;  %v276_v25 = vld [vmem:[%s3303_s22 + $0xe1] sm:$0xff]  ;;  %v274_v27 = vld [vmem:[%s3303_s22 + $0xc9] sm:$0xff] }
  0x1a   : > { %v3342_v23 = vpack.i.bf16 %v270_v21, %v269_v20  ;;  %v275_v24 = vld [vmem:[%s3303_s22 + $0xd9] sm:$0xff]  ;;  %v273_v26 = vld [vmem:[%s3303_s22 + $0xc1] sm:$0xff]  ;;  %v279_v30 = vld [vmem:[%s3303_s22 + $0x109] sm:$0xff] }
  0x1b   : > { %2557 = vrot.lane.b32.xlu1 %v3317_v10, %s3245_s23  ;;  %v3349_v28 = vpack.i.bf16 %v276_v25, %v275_v24  ;;  %v2581_v29 = vpack.i.bf16 %v274_v27, %v273_v26  ;;  %v280_v31 = vld [vmem:[%s3303_s22 + $0x111] sm:$0xff]  ;;  %v278_v33 = vld [vmem:[%s3303_s22 + $0xf9] sm:$0xff]  ;;  %v284_v37 = vld [vmem:[%s3303_s22 + $0x141] sm:$0xff] }
  0x1c   : > { %2547 = vrot.lane.b32.xlu0 %v3320_v11, %s3245_s23  ;;  %v277_v32 = vld [vmem:[%s3303_s22 + $0xf1] sm:$0xff]  ;;  %v3359_v34 = vpack.i.bf16 %v280_v31, %v279_v30  ;;  %v283_v36 = vld [vmem:[%s3303_s22 + $0x139] sm:$0xff]  ;;  %v281_v38 = vld [vmem:[%s3303_s22 + $0x121] sm:$0xff] }
  0x1d   : > { %v3362_v35 = vpack.i.bf16 %v278_v33, %v277_v32  ;;  %v282_v39 = vld [vmem:[%s3303_s22 + $0x129] sm:$0xff]  ;;  %v3370_v40 = vpack.i.bf16 %v284_v37, %v283_v36  ;;  %v288_v43 = vld [vmem:[%s3303_s22 + $0x171] sm:$0xff]  ;;  %v286_v45 = vld [vmem:[%s3303_s22 + $0x159] sm:$0xff] }
  0x1e   : > { %v3374_v41 = vpack.i.bf16 %v282_v39, %v281_v38  ;;  %v287_v42 = vld [vmem:[%s3303_s22 + $0x169] sm:$0xff]  ;;  %v285_v44 = vld [vmem:[%s3303_s22 + $0x151] sm:$0xff]  ;;  %v291_v48 = vld [vmem:[%s3303_s22 + $0x1a] sm:$0xff] }
  0x1f   : > { %2567 = vrot.lane.b32.xlu1 %v3328_v16, %s3245_s23  ;;  %v2616_v46 = vpack.i.bf16 %v288_v43, %v287_v42  ;;  %v3384_v47 = vpack.i.bf16 %v286_v45, %v285_v44  ;;  %v292_v49 = vld [vmem:[%s3303_s22 + $0x22] sm:$0xff]  ;;  %v290_v51 = vld [vmem:[%s3303_s22 + $0xa] sm:$0xff]  ;;  %v296_v55 = vld [vmem:[%s3303_s22 + $0x52] sm:$0xff] }
  0x20   : > { %2562 = vrot.lane.b32.xlu0 %v3332_v17, %s3245_s23  ;;  %v289_v50 = vld [vmem:[%s3303_s22 + $0x2] sm:$0xff]  ;;  %v3391_v52 = vpack.i.bf16 %v292_v49, %v291_v48  ;;  %v295_v54 = vld [vmem:[%s3303_s22 + $0x4a] sm:$0xff]  ;;  %v293_v56 = vld [vmem:[%s3303_s22 + $0x32] sm:$0xff] }
  0x21   : > { %v2621_v53 = vpack.i.bf16 %v290_v51, %v289_v50  ;;  %v294_v57 = vld [vmem:[%s3303_s22 + $0x3a] sm:$0xff]  ;;  %v3401_v58 = vpack.i.bf16 %v296_v55, %v295_v54  ;;  %v300_v61 = vld [vmem:[%s3303_s22 + $0x82] sm:$0xff]  ;;  %v298_v63 = vld [vmem:[%s3303_s22 + $0x6a] sm:$0xff] }
  0x22   : > { %v3404_v59 = vpack.i.bf16 %v294_v57, %v293_v56  ;;  %v299_v60 = vld [vmem:[%s3303_s22 + $0x7a] sm:$0xff]  ;;  %v297_v62 = vld [vmem:[%s3303_s22 + $0x62] sm:$0xff]  ;;  %v303_v2 = vld [vmem:[%s3303_s22 + $0xaa] sm:$0xff] }
  0x23   : > { %2577 = vrot.lane.b32.xlu1 %v2576_v22, %s3245_s23  ;;  %v3412_v0 = vpack.i.bf16 %v300_v61, %v299_v60  ;;  %v3416_v1 = vpack.i.bf16 %v298_v63, %v297_v62  ;;  %v304_v4 = vld [vmem:[%s3303_s22 + $0xb2] sm:$0xff]  ;;  %v302_v6 = vld [vmem:[%s3303_s22 + $0x9a] sm:$0xff]  ;;  %v308_v12 = vld [vmem:[%s3303_s22 + $0xe2] sm:$0xff] }
  0x24   : > { %2572 = vrot.lane.b32.xlu0 %v3342_v23, %s3245_s23  ;;  %v301_v5 = vld [vmem:[%s3303_s22 + $0x92] sm:$0xff]  ;;  %v2656_v7 = vpack.i.bf16 %v304_v4, %v303_v2  ;;  %v307_v9 = vld [vmem:[%s3303_s22 + $0xda] sm:$0xff]  ;;  %v305_v13 = vld [vmem:[%s3303_s22 + $0xc2] sm:$0xff] }
  0x25   : > { %v3426_v8 = vpack.i.bf16 %v302_v6, %v301_v5  ;;  %v306_v14 = vld [vmem:[%s3303_s22 + $0xca] sm:$0xff]  ;;  %v2666_v15 = vpack.i.bf16 %v308_v12, %v307_v9  ;;  %v312_v20 = vld [vmem:[%s3303_s22 + $0x112] sm:$0xff]  ;;  %v310_v22 = vld [vmem:[%s3303_s22 + $0xfa] sm:$0xff] }
  0x26   : > { %v2661_v18 = vpack.i.bf16 %v306_v14, %v305_v13  ;;  %v311_v19 = vld [vmem:[%s3303_s22 + $0x10a] sm:$0xff]  ;;  %v309_v21 = vld [vmem:[%s3303_s22 + $0xf2] sm:$0xff]  ;;  %v3445_v27 = vld [vmem:[%s3303_s22 + $0xe0] sm:$0xff] }
  0x27   : > { %2587 = vrot.lane.b32.xlu1 %v3349_v28, %s3245_s23  ;;  %v2676_v24 = vpack.i.bf16 %v312_v20, %v311_v19  ;;  %v2671_v25 = vpack.i.bf16 %v310_v22, %v309_v21  ;;  %v3442_v26 = vld [vmem:[%s3303_s22 + $0xd8] sm:$0xff]  ;;  %v3451_v30 = vld [vmem:[%s3303_s22 + $0x20] sm:$0xff]  ;;  %v3466_v33 = vld [vmem:[%s3303_s22 + $0xf0] sm:$0xff] }
  0x28   : > { %2582 = vrot.lane.b32.xlu0 %v2581_v29, %s3245_s23  ;;  %v3448_v29 = vld [vmem:[%s3303_s22 + $0x18] sm:$0xff]  ;;  %v2686_v31 = vpack.i.bf16 %v3445_v27, %v3442_v26  ;;  %v3472_v37 = vld [vmem:[%s3303_s22 + $0x30] sm:$0xff]  ;;  %v3506_v43 = vld [vmem:[%s3303_s22 + $0x48] sm:$0xff] }
  0x29   : > { %v2681_v32 = vpack.i.bf16 %v3451_v30, %v3448_v29  ;;  %v3469_v36 = vld [vmem:[%s3303_s22 + $0xf8] sm:$0xff]  ;;  %v3503_v42 = vld [vmem:[%s3303_s22 + $0x110] sm:$0xff]  ;;  %v2356_v48 = vld [vmem:[%s3303_s22 + $0x60] sm:$0xff] }
  0x2a   : > { %v3475_v38 = vld [vmem:[%s3303_s22 + $0x38] sm:$0xff]  ;;  %v2716_v39 = vpack.i.bf16 %v3469_v36, %v3466_v33  ;;  %4373 = vst [vmem:[#allocation2_spill] sm:$0xff] %v3503_v42  ;;  %v3509_v44 = vld [vmem:[%s3303_s22 + $0x50] sm:$0xff]  ;;  %v2357_v49 = vld [vmem:[%s3303_s22 + $0x68] sm:$0xff] }
  0x2b   : > { %2597 = vrot.lane.b32.xlu1 %v3359_v34, %s3245_s23  ;;  %v2831_v51 = vpack.i.bf16 %v2357_v49, %v2356_v48  ;;  %v251_v63 = vld [vmem:[%s3303_s22 + $0x138] sm:$0xff]  ;;  %v252_v2 = vld [vmem:[%s3303_s22 + $0x140] sm:$0xff] }
  0x2c   : > { %2592 = vrot.lane.b32.xlu0 %v3362_v35, %s3245_s23  ;;  %v235_v6 = vld [vmem:[%s3303_s22 + $0x78] sm:$0xff]  ;;  %v2896_v9 = vpack.i.bf16 %v252_v2, %v251_v63  ;;  %v2439_v14 = vld [vmem:[%s3303_s22 + $0x142] sm:$0xff] }
  0x2d   : > { %v3671_v63 = vld [vmem:[%s3303_s22 + $0x91] sm:$0xff] }
  0x2f   : > { %2607 = vrot.lane.b32.xlu1 %v3370_v40, %s3245_s23 }
  0x30   : > { %2602 = vrot.lane.b32.xlu0 %v3374_v41, %s3245_s23 }
  0x33   : > { %2617 = vrot.lane.b32.xlu1 %v2616_v46, %s3245_s23  ;;  %v2373_v46 = vld [vmem:[%s3303_s22 + $0x128] sm:$0xff] }
  0x34   : > { %2612 = vrot.lane.b32.xlu0 %v3384_v47, %s3245_s23 }
  0x37   : > { %2627 = vrot.lane.b32.xlu1 %v3391_v52, %s3246_s24 }
  0x38   : > { %2622 = vrot.lane.b32.xlu0 %v2621_v53, %s3246_s24 }
  0x3b   : > { %2637 = vrot.lane.b32.xlu1 %v3401_v58, %s3246_s24 }
  0x3c   : > { %2632 = vrot.lane.b32.xlu0 %v3404_v59, %s3246_s24 }
  0x3f   : > { %2647 = vrot.lane.b32.xlu1 %v3412_v0, %s3246_s24 }
  0x40   : > { %2642 = vrot.lane.b32.xlu0 %v3416_v1, %s3246_s24 }
  0x43   : > { %2657 = vrot.lane.b32.xlu1 %v2656_v7, %s3246_s24  ;;  %v236_v7 = vld [vmem:[%s3303_s22 + $0x80] sm:$0xff] }
  0x44   : > { %2652 = vrot.lane.b32.xlu0 %v3426_v8, %s3246_s24 }
  0x47   : > { %2667 = vrot.lane.b32.xlu1 %v2666_v15, %s3246_s24 }
  0x48   : > { %2662 = vrot.lane.b32.xlu0 %v2661_v18, %s3246_s24 }
  0x4b   : > { %2677 = vrot.lane.b32.xlu1 %v2676_v24, %s3246_s24 }
  0x4c   : > { %2672 = vrot.lane.b32.xlu0 %v2671_v25, %s3246_s24 }
  0x4f   : > { %2687 = vrot.lane.b32.xlu1 %v2686_v31, %s3247_s25 }
  0x50   : > { %2682 = vrot.lane.b32.xlu0 %v2681_v32, %s3247_s25  ;;  %v237_v32 = vld [vmem:[%s3303_s22 + $0x90] sm:$0xff] }
  0x53   : > { %2697 = vrot.lane.b32.xlu1 %v3349_v28, %s3248_s26  ;;  %v3500_v28 = vld [vmem:[%s3303_s22 + $0x108] sm:$0xff] }
  0x54   : > { %2692 = vrot.lane.b32.xlu0 %v3320_v11, %s3248_s26  ;;  %v2711_v11 = vpack.i.bf16 %v3475_v38, %v3472_v37  ;;  %v2776_v45 = vpack.i.bf16 %v3503_v42, %v3500_v28 }
  0x57   : > { %2707 = vrot.lane.b32.xlu1 %v2666_v15, %s3249_s27 }
  0x58   : > { %2702 = vrot.lane.b32.xlu0 %v3391_v52, %s3249_s27 }
  0x5b   : > { %2717 = vrot.lane.b32.xlu1 %v2716_v39, %s3250_s28 }
  0x5c   : > { %2712 = vrot.lane.b32.xlu0 %v2711_v11, %s3250_s28 }
  0x5f   : > { %2727 = vrot.lane.b32.xlu1 %v3362_v35, %s3251_s29 }
  0x60   : > { %2722 = vrot.lane.b32.xlu0 %v3308_v3, %s3251_s29 }
  0x63   : > { %2737 = vrot.lane.b32.xlu1 %v2671_v25, %s3252_s30 }
  0x64   : > { %2732 = vrot.lane.b32.xlu0 %v3404_v59, %s3252_s30 }
  0x67   : > { %2747 = vrot.lane.b32.xlu1 %v2716_v39, %s3247_s25  ;;  %v238_v39 = vld [vmem:[%s3303_s22 + $0x98] sm:$0xff] }
  0x68   : > { %2742 = vrot.lane.b32.xlu0 %v2711_v11, %s3247_s25 }
  0x6b   : > { %2757 = vrot.lane.b32.xlu1 %v3362_v35, %s3248_s26  ;;  %v2372_v35 = vld [vmem:[%s3303_s22 + $0x120] sm:$0xff] }
  0x6c   : > { %2752 = vrot.lane.b32.xlu0 %v3308_v3, %s3248_s26  ;;  %v2771_v3 = vpack.i.bf16 %v3509_v44, %v3506_v43  ;;  %v2836_v50 = vpack.i.bf16 %v2373_v46, %v2372_v35  ;;  %v253_v35 = vld [vmem:[%s3303_s22 + $0x150] sm:$0xff]  ;;  %v254_v46 = vld [vmem:[%s3303_s22 + $0x158] sm:$0xff] }
  0x6f   : > { %2767 = vrot.lane.b32.xlu1 %v2671_v25, %s3249_s27 }
  0x70   : > { %2762 = vrot.lane.b32.xlu0 %v3404_v59, %s3249_s27 }
  0x73   : > { %2777 = vrot.lane.b32.xlu1 %v2776_v45, %s3250_s28 }
  0x74   : > { %2772 = vrot.lane.b32.xlu0 %v2771_v3, %s3250_s28 }
  0x77   : > { %2787 = vrot.lane.b32.xlu1 %v3359_v34, %s3251_s29 }
  0x78   : > { %2782 = vrot.lane.b32.xlu0 %v3317_v10, %s3251_s29 }
  0x7b   : > { %2797 = vrot.lane.b32.xlu1 %v2676_v24, %s3252_s30 }
  0x7c   : > { %2792 = vrot.lane.b32.xlu0 %v3401_v58, %s3252_s30 }
  0x7f   : > { %2807 = vrot.lane.b32.xlu1 %v2776_v45, %s3247_s25  ;;  %v3632_v45 = vpack.i.bf16 %v238_v39, %v237_v32  ;;  %v2410_v32 = vld [vmem:[%s3303_s22 + $0x169] sm:$0xff] }
  0x80   : > { %2802 = vrot.lane.b32.xlu0 %v2771_v3, %s3247_s25 }
  0x83   : > { %2817 = vrot.lane.b32.xlu1 %v3359_v34, %s3248_s26  ;;  %v2437_v34 = vld [vmem:[%s3303_s22 + $0x12a] sm:$0xff] }
  0x84   : > { %2812 = vrot.lane.b32.xlu0 %v3317_v10, %s3248_s26  ;;  %v2436_v10 = vld [vmem:[%s3303_s22 + $0x122] sm:$0xff] }
  0x85   : > { %v2856_v56 = vpack.i.bf16 %v2437_v34, %v2436_v10 }
  0x87   : > { %2827 = vrot.lane.b32.xlu1 %v2676_v24, %s3249_s27 }
  0x88   : > { %2822 = vrot.lane.b32.xlu0 %v3401_v58, %s3249_s27 }
  0x89   : > { %v3540_v52 = vpop.permute.xlu1 %2552 }
  0x8a   : > { %v3542_v53 = vpop.permute.xlu0 %2542 }
  0x8b   : > { %2837 = vrot.lane.b32.xlu1 %v2836_v50, %s3250_s28  ;;  %v2545_v39 = vunpack.i.h.bf16 %v3542_v53 }
  0x8c   : > { %2832 = vrot.lane.b32.xlu0 %v2831_v51, %s3250_s28 }
  0x8d   : > { %v3548_v54 = vpop.permute.xlu1 %2557 }
  0x8e   : > { %v3550_v55 = vpop.permute.xlu0 %2547 }
  0x8f   : > { %2847 = vrot.lane.b32.xlu1 %v3374_v41, %s3251_s29 }
  0x90   : > { %2842 = vrot.lane.b32.xlu0 %v3332_v17, %s3251_s29 }
  0x91   : > { %v3556_v57 = vpop.permute.xlu1 %2567 }
  0x92   : > { %4374 = vst [vmem:[#allocation3_spill] sm:$0xff] %v3556_v57  ;;  %v3558_v58 = vpop.permute.xlu0 %2562 }
  0x93   : > { %4375 = vst [vmem:[#allocation4_spill] sm:$0xff] %v3558_v58  ;;  %2857 = vrot.lane.b32.xlu1 %v2856_v56, %s3252_s30 }
  0x94   : > { %2852 = vrot.lane.b32.xlu0 %v3416_v1, %s3252_s30 }
  0x95   : > { %v3563_v59 = vpop.permute.xlu1 %2577 }
  0x96   : > { %4376 = vst [vmem:[#allocation5_spill] sm:$0xff] %v3563_v59  ;;  %v3565_v60 = vpop.permute.xlu0 %2572  ;;  %v256_v59 = vld [vmem:[%s3303_s22 + $0x170] sm:$0xff] }
  0x97   : > { %4377 = vst [vmem:[#allocation6_spill] sm:$0xff] %v3565_v60  ;;  %2867 = vrot.lane.b32.xlu1 %v2836_v50, %s3247_s25  ;;  %v2440_v50 = vld [vmem:[%s3303_s22 + $0x152] sm:$0xff] }
  0x98   : > { %2862 = vrot.lane.b32.xlu0 %v2831_v51, %s3247_s25  ;;  %v2441_v51 = vld [vmem:[%s3303_s22 + $0x15a] sm:$0xff] }
  0x99   : > { %v3569_v61 = vpop.permute.xlu1 %2587  ;;  %v3662_v34 = vpack.i.bf16 %v2441_v51, %v2440_v50  ;;  %v2394_v51 = vld [vmem:[%s3303_s22 + $0xa9] sm:$0xff] }
  0x9a   : > { %v3571_v62 = vpop.permute.xlu0 %2582 }
  0x9b   : > { %2877 = vrot.lane.b32.xlu1 %v3374_v41, %s3248_s26  ;;  %v2891_v41 = vpack.i.bf16 %v236_v7, %v235_v6  ;;  %v3676_v6 = vld [vmem:[%s3303_s22 + $0x99] sm:$0xff] }
  0x9c   : > { %2872 = vrot.lane.b32.xlu0 %v3332_v17, %s3248_s26  ;;  %v2438_v17 = vld [vmem:[%s3303_s22 + $0x13a] sm:$0xff]  ;;  %v3679_v7 = vld [vmem:[%s3303_s22 + $0x92] sm:$0xff] }
  0x9d   : > { %v3579_v4 = vpop.permute.xlu1 %2597 }
  0x9e   : > { %v3581_v5 = vpop.permute.xlu0 %2592 }
  0x9f   : > { %2887 = vrot.lane.b32.xlu1 %v2856_v56, %s3249_s27 }
  0xa0   : > { %2882 = vrot.lane.b32.xlu0 %v3416_v1, %s3249_s27  ;;  %v2916_v1 = vpack.i.bf16 %v2439_v14, %v2438_v17  ;;  %v239_v17 = vld [vmem:[%s3303_s22 + $0xa8] sm:$0xff] }
  0xa1   : > { %v3588_v12 = vpop.permute.xlu1 %2607 }
  0xa2   : > { %4378 = vst [vmem:[#allocation7_spill] sm:$0xff] %v3588_v12  ;;  %v3590_v13 = vpop.permute.xlu0 %2602 }
  0xa3   : > { %4379 = vst [vmem:[#allocation8_spill] sm:$0xff] %v3590_v13  ;;  %2897 = vrot.lane.b32.xlu1 %v2896_v9, %s3250_s28 }
  0xa4   : > { %2892 = vrot.lane.b32.xlu0 %v2891_v41, %s3250_s28 }
  0xa5   : > { %v3596_v15 = vpop.permute.xlu1 %2617 }
  0xa6   : > { %4380 = vst [vmem:[#allocation9_spill] sm:$0xff] %v3596_v15  ;;  %v3598_v18 = vpop.permute.xlu0 %2612  ;;  %v2584_v15 = vunpack.i.l.bf16 %v3571_v62 }
  0xa7   : > { %4381 = vst [vmem:[#allocation10_spill] sm:$0xff] %v3598_v18  ;;  %2907 = vrot.lane.b32.xlu1 %v3370_v40, %s3251_s29 }
  0xa8   : > { %2902 = vrot.lane.b32.xlu0 %v3328_v16, %s3251_s29 }
  0xa9   : > { %v3604_v19 = vpop.permute.xlu1 %2627 }
  0xaa   : > { %v3606_v20 = vpop.permute.xlu0 %2622 }
  0xab   : > { %2917 = vrot.lane.b32.xlu1 %v2916_v1, %s3252_s30  ;;  %v2624_v18 = vunpack.i.l.bf16 %v3606_v20 }
  0xac   : > { %2912 = vrot.lane.b32.xlu0 %v3412_v0, %s3252_s30 }
  0xad   : > { %v3611_v21 = vpop.permute.xlu1 %2637 }
  0xae   : > { %v3613_v22 = vpop.permute.xlu0 %2632 }
  0xaf   : > { %2927 = vrot.lane.b32.xlu1 %v2891_v41, %s3247_s25  ;;  %v226_v41 = vld [vmem:[%s3303_s22 + $0x8] sm:$0xff] }
  0xb0   : > { %2922 = vrot.lane.b32.xlu0 %v2856_v56, %s3246_s24  ;;  %v3668_v56 = vld [vmem:[%s3303_s22 + $0x159] sm:$0xff] }
  0xb1   : > { %v3617_v24 = vpop.permute.xlu1 %2647 }
  0xb2   : > { %4382 = vst [vmem:[#allocation11_spill] sm:$0xff] %v3617_v24  ;;  %v3619_v25 = vpop.permute.xlu0 %2642 }
  0xb3   : > { %4383 = vst [vmem:[#allocation12_spill] sm:$0xff] %v3619_v25  ;;  %2937 = vrot.lane.b32.xlu1 %v3328_v16, %s3248_s26 }
  0xb4   : > { %2932 = vrot.lane.b32.xlu0 %v2896_v9, %s3247_s25  ;;  %v3682_v9 = vld [vmem:[%s3303_s22 + $0x9a] sm:$0xff] }
  0xb5   : > { %v3624_v31 = vpop.permute.xlu1 %2657 }
  0xb6   : > { %4384 = vst [vmem:[#allocation13_spill] sm:$0xff] %v3624_v31  ;;  %v3628_v11 = vpop.permute.xlu0 %2652  ;;  %v2395_v31 = vld [vmem:[%s3303_s22 + $0xb1] sm:$0xff] }
  0xb7   : > { %4385 = vst [vmem:[#allocation14_spill] sm:$0xff] %v3628_v11  ;;  %2947 = vrot.lane.b32.xlu1 %v3412_v0, %s3249_s27  ;;  %v2961_v0 = vpack.i.bf16 %v254_v46, %v253_v35  ;;  %v2544_v35 = vunpack.i.l.bf16 %v3542_v53  ;;  %v3001_v46 = vpack.i.bf16 %v3676_v6, %v3671_v63  ;;  %v255_v53 = vld [vmem:[%s3303_s22 + $0x168] sm:$0xff]  ;;  %v2625_v11 = vunpack.i.h.bf16 %v3606_v20  ;;  %v3712_v63 = vld [vmem:[%s3303_s22 + $0xc0] sm:$0xff] }
  0xb8   : > { %2942 = vrot.lane.b32.xlu0 %v3370_v40, %s3248_s26  ;;  %v3715_v6 = vld [vmem:[%s3303_s22 + $0xc8] sm:$0xff]  ;;  %v3719_v57 = vpack.i.bf16 %v256_v59, %v255_v53  ;;  %v3728_v58 = vpack.i.bf16 %v2395_v31, %v2394_v51 }
  0xb9   : > { %v3636_v3 = vpop.permute.xlu1 %2667 }
  0xba   : > { %v3638_v16 = vpop.permute.xlu0 %2662 }
  0xbb   : > { %2957 = vrot.lane.b32.xlu1 %v3632_v45, %s3250_s28  ;;  %v2665_v50 = vunpack.i.h.bf16 %v3638_v16  ;;  %v2664_v24 = vunpack.i.l.bf16 %v3638_v16  ;;  %v1545_v16 = vsel %vm1543_vm0, %v226_v41, %v2545_v39 }
  0xbc   : > { %2952 = vrot.lane.b32.xlu0 %v2916_v1, %s3249_s27 }
  0xbd   : > { %v3645_v48 = vpop.permute.xlu1 %2677 }
  0xbe   : > { %v3647_v40 = vpop.permute.xlu0 %2672 }
  0xbf   : > { %2967 = vrot.lane.b32.xlu1 %v3342_v23, %s3251_s29  ;;  %v3665_v23 = vld [vmem:[%s3303_s22 + $0x151] sm:$0xff] }
  0xc0   : > { %2962 = vrot.lane.b32.xlu0 %v2961_v0, %s3250_s28  ;;  %v3006_v14 = vpack.i.bf16 %v3668_v56, %v3665_v23  ;;  %v240_v23 = vld [vmem:[%s3303_s22 + $0xb0] sm:$0xff]  ;;  %v2585_v56 = vunpack.i.h.bf16 %v3571_v62 }
  0xc1   : > { %v3652_v49 = vpop.permute.xlu1 %2687  ;;  %v3721_v62 = vpack.i.bf16 %v240_v23, %v239_v17 }
  0xc2   : > { %v3656_v10 = vpop.permute.xlu0 %2682  ;;  %v2690_v25 = vunpack.i.h.bf16 %v3652_v49  ;;  %v2689_v20 = vunpack.i.l.bf16 %v3652_v49  ;;  %v1560_v49 = vsel %vm1543_vm0, %v3712_v63, %v2584_v15 }
  0xc3   : > { %2977 = vrot.lane.b32.xlu1 %v3426_v8, %s3252_s30  ;;  %v225_v8 = vld [vmem:[%s3303_s22] sm:$0xff]  ;;  %v2685_v59 = vunpack.i.h.bf16 %v3656_v10  ;;  %v2684_v17 = vunpack.i.l.bf16 %v3656_v10  ;;  %v1593_v41 = vsel %vm1576_vm1, %v1560_v49, %v2664_v24 }
  0xc4   : > { %2972 = vrot.lane.b32.xlu0 %v3384_v47, %s3251_s29  ;;  %v1544_v42 = vsel %vm1543_vm0, %v225_v8, %v2544_v35  ;;  %v1578_v8 = vsel %vm1576_vm1, %v1545_v16, %v2625_v11  ;;  %v1626_v15 = vsel %vm1609_vm2, %v1593_v41, %v2689_v20 }
  0xc5   : > { %v3673_v2 = vpop.permute.xlu1 %2697  ;;  %v1577_v31 = vsel %vm1576_vm1, %v1544_v42, %v2624_v18  ;;  %v1611_v24 = vsel %vm1609_vm2, %v1578_v8, %v2685_v59 }
  0xc6   : > { %v3684_v47 = vpop.permute.xlu0 %2692  ;;  %v2700_v39 = vunpack.i.h.bf16 %v3673_v2  ;;  %v1610_v18 = vsel %vm1609_vm2, %v1577_v31, %v2684_v17 }
  0xc7   : > { %2987 = vrot.lane.b32.xlu1 %v2916_v1, %s3246_s24  ;;  %v2411_v1 = vld [vmem:[%s3303_s22 + $0x171] sm:$0xff]  ;;  %v2695_v51 = vunpack.i.h.bf16 %v3684_v47  ;;  %v2694_v42 = vunpack.i.l.bf16 %v3684_v47 }
  0xc8   : > { %2982 = vrot.lane.b32.xlu0 %v3662_v34, %s3252_s30  ;;  %v3726_v13 = vpack.i.bf16 %v2411_v1, %v2410_v32 }
  0xc9   : > { %v2708_v60 = vpop.permute.xlu1 %2707  ;;  %v1643_v17 = vsel %vm1642_vm3, %v1610_v18, %v2694_v42  ;;  %v1644_v59 = vsel %vm1642_vm3, %v1611_v24, %v2695_v51 }
  0xca   : > { %v2703_v12 = vpop.permute.xlu0 %2702  ;;  %v2710_v11 = vunpack.i.h.bf16 %v2708_v60 }
  0xcb   : > { %2997 = vrot.lane.b32.xlu1 %v2961_v0, %s3247_s25  ;;  %v1561_v0 = vsel %vm1543_vm0, %v3715_v6, %v2585_v56  ;;  %v2704_v23 = vunpack.i.l.bf16 %v2703_v12 }
  0xcc   : > { %2992 = vrot.lane.b32.xlu0 %v3632_v45, %s3247_s25  ;;  %v1594_v10 = vsel %vm1576_vm1, %v1561_v0, %v2665_v50  ;;  %v2699_v45 = vunpack.i.l.bf16 %v3673_v2  ;;  %v2709_v50 = vunpack.i.l.bf16 %v2708_v60  ;;  %v2705_v2 = vunpack.i.h.bf16 %v2703_v12 }
  0xcd   : > { %v2718_v32 = vpop.permute.xlu1 %2717  ;;  %v1627_v1 = vsel %vm1609_vm2, %v1594_v10, %v2690_v25  ;;  %v1676_v41 = vsel %vm1675_vm4, %v1643_v17, %v2704_v23  ;;  %v2427_v17 = vld [vmem:[%s3303_s22 + $0xb2] sm:$0xff] }
  0xce   : > { %v2713_v35 = vpop.permute.xlu0 %2712  ;;  %v2720_v56 = vunpack.i.h.bf16 %v2718_v32  ;;  %v2719_v53 = vunpack.i.l.bf16 %v2718_v32  ;;  %v1659_v20 = vsel %vm1642_vm3, %v1626_v15, %v2699_v45  ;;  %v1660_v47 = vsel %vm1642_vm3, %v1627_v1, %v2700_v39 }
  0xcf   : > { %3007 = vrot.lane.b32.xlu1 %v3006_v14, %s3248_s26  ;;  %v2715_v16 = vunpack.i.h.bf16 %v2713_v35  ;;  %v2714_v14 = vunpack.i.l.bf16 %v2713_v35  ;;  %v1692_v12 = vsel %vm1675_vm4, %v1659_v20, %v2709_v50  ;;  %v4386_v32 = vpack.i.bf16 %v3682_v9, %v3679_v7 }
  0xd0   : > { %3002 = vrot.lane.b32.xlu0 %v3001_v46, %s3248_s26  ;;  %v1693_v46 = vsel %vm1675_vm4, %v1660_v47, %v2710_v11  ;;  %v1677_v10 = vsel %vm1675_vm4, %v1644_v59, %v2705_v2  ;;  %v1725_v45 = vsel %vm1708_vm5, %v1692_v12, %v2719_v53  ;;  %v2442_v53 = vld [vmem:[%s3303_s22 + $0x16a] sm:$0xff] }
  0xd1   : > { %v2728_v25 = vpop.permute.xlu1 %2727  ;;  %v1726_v35 = vsel %vm1708_vm5, %v1693_v46, %v2720_v56  ;;  %v1709_v42 = vsel %vm1708_vm5, %v1676_v41, %v2714_v14  ;;  %v1710_v18 = vsel %vm1708_vm5, %v1677_v10, %v2715_v16  ;;  %v2550_v41 = vunpack.i.h.bf16 %v3550_v55 }
  0xd2   : > { %v2723_v49 = vpop.permute.xlu0 %2722  ;;  %v2730_v60 = vunpack.i.h.bf16 %v2728_v25  ;;  %v2729_v0 = vunpack.i.l.bf16 %v2728_v25  ;;  %v2443_v25 = vld [vmem:[%s3303_s22 + $0x172] sm:$0xff]  ;;  %v2549_v10 = vunpack.i.l.bf16 %v3550_v55 }
  0xd3   : > { %3017 = vrot.lane.b32.xlu1 %v3662_v34, %s3249_s27  ;;  %v2725_v31 = vunpack.i.h.bf16 %v2723_v49  ;;  %v2724_v8 = vunpack.i.l.bf16 %v2723_v49  ;;  %v2426_v49 = vld [vmem:[%s3303_s22 + $0xaa] sm:$0xff] }
  0xd4   : > { %3012 = vrot.lane.b32.xlu0 %v4386_v32, %s3249_s27  ;;  %v1758_v24 = vsel %vm1741_vm6, %v1725_v45, %v2729_v0  ;;  %v1759_v11 = vsel %vm1741_vm6, %v1726_v35, %v2730_v60  ;;  %v3791_v0 = vpack.i.bf16 %v2443_v25, %v2442_v53  ;;  %v3797_v46 = vpack.i.bf16 %v2427_v17, %v2426_v49  ;;  %v2396_v32 = vld [vmem:[%s3303_s22 + $0xc1] sm:$0xff] }
  0xd5   : > { %v2738_v39 = vpop.permute.xlu1 %2737  ;;  %v1742_v23 = vsel %vm1741_vm6, %v1709_v42, %v2724_v8  ;;  %v1743_v56 = vsel %vm1741_vm6, %v1710_v18, %v2725_v31  ;;  %v2380_v45 = vld [vmem:[%s3303_s22 + $0x180] sm:$0xff]  ;;  %v2381_v35 = vld [vmem:[%s3303_s22 + $0x188] sm:$0xff]  ;;  %v2629_v42 = vunpack.i.l.bf16 %v3604_v19 }
  0xd6   : > { %v2740_v15 = vunpack.i.h.bf16 %v2738_v39  ;;  %v2739_v1 = vunpack.i.l.bf16 %v2738_v39  ;;  %v2733_v51 = vpop.permute.xlu0 %2732  ;;  %v2397_v39 = vld [vmem:[%s3303_s22 + $0xc9] sm:$0xff] }
  0xd7   : > { %v2735_v7 = vunpack.i.h.bf16 %v2733_v51  ;;  %v2734_v9 = vunpack.i.l.bf16 %v2733_v51  ;;  %3027 = vrot.lane.b32.xlu1 %v3719_v57, %s3250_s28  ;;  %v2630_v51 = vunpack.i.h.bf16 %v3604_v19  ;;  %v1546_v19 = vsel %vm1543_vm0, %v3448_v29, %v2549_v10 }
  0xd8   : > { %3022 = vrot.lane.b32.xlu0 %v3721_v62, %s3250_s28  ;;  %v1791_v50 = vsel %vm1774_vm7, %v1758_v24, %v2739_v1  ;;  %v1792_v2 = vsel %vm1774_vm7, %v1759_v11, %v2740_v15  ;;  %v2590_v15 = vunpack.i.h.bf16 %v3569_v61  ;;  %v2589_v1 = vunpack.i.l.bf16 %v3569_v61 }
  0xd9   : > { %v2748_v20 = vpop.permute.xlu1 %2747  ;;  %v1815_v47 = vpack.c.bf16 %v1792_v2, %v1791_v50  ;;  %v1775_v16 = vsel %vm1774_vm7, %v1742_v23, %v2734_v9  ;;  %v1776_v14 = vsel %vm1774_vm7, %v1743_v56, %v2735_v7  ;;  %v2670_v7 = vunpack.i.h.bf16 %v3636_v3 }
  0xda   : > { %v2743_v59 = vpop.permute.xlu0 %2742  ;;  %v1807_v60 = vpack.c.bf16 %v1776_v14, %v1775_v16  ;;  %v2669_v9 = vunpack.i.l.bf16 %v3636_v3  ;;  %v3817_v24 = vpack.i.bf16 %v3715_v6, %v3712_v63  ;;  %v2750_v11 = vunpack.i.h.bf16 %v2748_v20 }
  0xdb   : > { %3037 = vrot.lane.b32.xlu1 %v3726_v13, %s3251_s29  ;;  %2491 = vmatprep.subr.msk.bf16.mxu0 %vm1837_vm8, %v1815_v47  ;;  %v2749_v50 = vunpack.i.l.bf16 %v2748_v20  ;;  %v3821_v61 = vpack.i.bf16 %v2397_v39, %v2396_v32  ;;  %v3823_v2 = vpack.i.bf16 %v2381_v35, %v2380_v45  ;;  %v1547_v3 = vsel %vm1543_vm0, %v3451_v30, %v2550_v41 }
  0xdc   : > { %3032 = vrot.lane.b32.xlu0 %v3728_v58, %s3251_s29  ;;  %2492 = vmatprep.subr.msk.bf16.mxu1 %vm1837_vm8, %v1815_v47  ;;  %v1845_v12 = vsel %vm1837_vm8, %v1807_v60, 0  ;;  %v2745_v23 = vunpack.i.h.bf16 %v2743_v59  ;;  %v2744_v56 = vunpack.i.l.bf16 %v2743_v59  ;;  %v1562_v63 = vsel %vm1543_vm0, %v3442_v26, %v2589_v1 }
  0xdd   : > { %2456 = vmatpush3.bf16.xpose.msra.mxu0 %v1845_v12  ;;  %2483 = vmatpush3.bf16.xpose.msra.mxu1 %v1845_v12  ;;  %v2758_v31 = vpop.permute.xlu1 %2757  ;;  %v1563_v6 = vsel %vm1543_vm0, %v3445_v27, %v2590_v15  ;;  %v1580_v53 = vsel %vm1576_vm1, %v1547_v3, %v2630_v51  ;;  %v1595_v29 = vsel %vm1576_vm1, %v1562_v63, %v2669_v9 }
  0xde   : > { %v2753_v8 = vpop.permute.xlu0 %2752  ;;  %v1596_v30 = vsel %vm1576_vm1, %v1563_v6, %v2670_v7  ;;  %v2760_v20 = vunpack.i.h.bf16 %v2758_v31  ;;  %v2759_v47 = vunpack.i.l.bf16 %v2758_v31  ;;  %v1613_v17 = vsel %vm1609_vm2, %v1580_v53, %v2745_v23 }
  0xdf   : > { %3047 = vrot.lane.b32.xlu1 %v3791_v0, %s3252_s30  ;;  %v1629_v14 = vsel %vm1609_vm2, %v1596_v30, %v2750_v11  ;;  %v2755_v26 = vunpack.i.h.bf16 %v2753_v8  ;;  %v2754_v49 = vunpack.i.l.bf16 %v2753_v8 }
  0xe0   : > { %3042 = vrot.lane.b32.xlu0 %v3797_v46, %s3252_s30  ;;  %v1662_v8 = vsel %vm1642_vm3, %v1629_v14, %v2760_v20 }
  0xe1   : > { %v2768_v18 = vpop.permute.xlu1 %2767  ;;  %v1646_v1 = vsel %vm1642_vm3, %v1613_v17, %v2755_v26  ;;  %v2412_v17 = vld [vmem:[%s3303_s22 + $0x181] sm:$0xff] }
  0xe2   : > { %v2763_v55 = vpop.permute.xlu0 %2762  ;;  %v2770_v59 = vunpack.i.h.bf16 %v2768_v18  ;;  %v2769_v60 = vunpack.i.l.bf16 %v2768_v18 }
  0xe3   : > { %3057 = vrot.lane.b32.xlu1 %v3721_v62, %s3247_s25  ;;  %v1579_v62 = vsel %vm1576_vm1, %v1546_v19, %v2629_v42  ;;  %v2765_v12 = vunpack.i.h.bf16 %v2763_v55  ;;  %v2764_v31 = vunpack.i.l.bf16 %v2763_v55 }
  0xe4   : > { %3052 = vrot.lane.b32.xlu0 %v3662_v34, %s3246_s24  ;;  %v1628_v34 = vsel %vm1609_vm2, %v1595_v29, %v2749_v50  ;;  %v1612_v27 = vsel %vm1609_vm2, %v1579_v62, %v2744_v56  ;;  %v1695_v18 = vsel %vm1675_vm4, %v1662_v8, %v2770_v59  ;;  %v2413_v59 = vld [vmem:[%s3303_s22 + $0x189] sm:$0xff] }
  0xe5   : > { %v2778_v25 = vpop.permute.xlu1 %2777  ;;  %v1661_v39 = vsel %vm1642_vm3, %v1628_v34, %v2759_v47  ;;  %v1645_v15 = vsel %vm1642_vm3, %v1612_v27, %v2754_v49  ;;  %v1679_v11 = vsel %vm1675_vm4, %v1646_v1, %v2765_v12  ;;  %v2429_v34 = vld [vmem:[%s3303_s22 + $0xca] sm:$0xff] }
  0xe6   : > { %v2773_v16 = vpop.permute.xlu0 %2772  ;;  %v2780_v32 = vunpack.i.h.bf16 %v2778_v25  ;;  %v2779_v41 = vunpack.i.l.bf16 %v2778_v25  ;;  %v1678_v55 = vsel %vm1675_vm4, %v1645_v15, %v2764_v31  ;;  %v2445_v8 = vld [vmem:[%s3303_s22 + $0x18a] sm:$0xff]  ;;  %v2554_v15 = vunpack.i.l.bf16 %v3540_v52 }
  0xe7   : > { %3067 = vrot.lane.b32.xlu1 %v3728_v58, %s3248_s26  ;;  %v2775_v45 = vunpack.i.h.bf16 %v2773_v16  ;;  %v2774_v58 = vunpack.i.l.bf16 %v2773_v16  ;;  %v2428_v16 = vld [vmem:[%s3303_s22 + $0xc2] sm:$0xff] }
  0xe8   : > { %3062 = vrot.lane.b32.xlu0 %v3719_v57, %s3247_s25  ;;  %v1694_v57 = vsel %vm1675_vm4, %v1661_v39, %v2769_v60  ;;  %v1728_v19 = vsel %vm1708_vm5, %v1695_v18, %v2780_v32  ;;  %v3882_v31 = vpack.i.bf16 %v2429_v34, %v2428_v16  ;;  %v2444_v39 = vld [vmem:[%s3303_s22 + $0x182] sm:$0xff]  ;;  %v2595_v18 = vunpack.i.h.bf16 %v3581_v5 }
  0xe9   : > { %v2788_v10 = vpop.permute.xlu1 %2787  ;;  %v1727_v50 = vsel %vm1708_vm5, %v1694_v57, %v2779_v41  ;;  %v1712_v23 = vsel %vm1708_vm5, %v1679_v11, %v2775_v45  ;;  %v3888_v41 = vpack.i.bf16 %v2413_v59, %v2412_v17  ;;  %v3901_v1 = vpack.i.bf16 %v2445_v8, %v2444_v39  ;;  %v3910_v57 = vld [vmem:[%s3303_s22 + $0xe0] sm:$0xff] }
  0xea   : > { %v2783_v35 = vpop.permute.xlu0 %2782  ;;  %v2790_v51 = vunpack.i.h.bf16 %v2788_v10  ;;  %v2789_v42 = vunpack.i.l.bf16 %v2788_v10  ;;  %v2675_v11 = vunpack.i.h.bf16 %v3647_v40 }
  0xeb   : > { %3077 = vrot.lane.b32.xlu1 %v3797_v46, %s3249_s27  ;;  %v2785_v7 = vunpack.i.h.bf16 %v2783_v35  ;;  %v2784_v9 = vunpack.i.l.bf16 %v2783_v35  ;;  %v1711_v46 = vsel %vm1708_vm5, %v1678_v55, %v2774_v58  ;;  %v3895_v58 = vld [vmem:[%s3303_s22 + $0x198] sm:$0xff]  ;;  %v2555_v35 = vunpack.i.h.bf16 %v3540_v52 }
  0xec   : > { %3072 = vrot.lane.b32.xlu0 %v3726_v13, %s3248_s26  ;;  %v1760_v13 = vsel %vm1741_vm6, %v1727_v50, %v2789_v42  ;;  %v1761_v62 = vsel %vm1741_vm6, %v1728_v19, %v2790_v51  ;;  %v3904_v51 = vld [vmem:[%s3303_s22 + $0x1a0] sm:$0xff]  ;;  %v3907_v42 = vld [vmem:[%s3303_s22 + $0xd8] sm:$0xff]  ;;  %v2634_v55 = vunpack.i.l.bf16 %v3613_v22  ;;  %v2674_v50 = vunpack.i.l.bf16 %v3647_v40 }
  0xed   : > { %v2798_v3 = vpop.permute.xlu1 %2797  ;;  %v1744_v29 = vsel %vm1741_vm6, %v1711_v46, %v2784_v9  ;;  %v1745_v30 = vsel %vm1741_vm6, %v1712_v23, %v2785_v7  ;;  %v2594_v7 = vunpack.i.l.bf16 %v3581_v5  ;;  %v2635_v9 = vunpack.i.h.bf16 %v3613_v22 }
  0xee   : > { %v2800_v56 = vunpack.i.h.bf16 %v2798_v3  ;;  %v2799_v63 = vunpack.i.l.bf16 %v2798_v3  ;;  %v2793_v6 = vpop.permute.xlu0 %2792  ;;  %v3156_v23 = vpack.i.bf16 %v3904_v51, %v3895_v58  ;;  %v3151_v5 = vpack.i.bf16 %v3910_v57, %v3907_v42  ;;  %v2430_v58 = vld [vmem:[%s3303_s22 + $0xda] sm:$0xff]  ;;  %v2431_v51 = vld [vmem:[%s3303_s22 + $0xe2] sm:$0xff] }
  0xef   : > { %v2795_v53 = vunpack.i.h.bf16 %v2793_v6  ;;  %v2794_v25 = vunpack.i.l.bf16 %v2793_v6  ;;  %3087 = vrot.lane.b32.xlu1 %v3817_v24, %s3250_s28  ;;  %v1548_v22 = vsel %vm1543_vm0, %v3472_v37, %v2554_v15  ;;  %v1565_v6 = vsel %vm1543_vm0, %v3469_v36, %v2595_v18 }
  0xf0   : > { %v1793_v20 = vsel %vm1774_vm7, %v1760_v13, %v2799_v63  ;;  %v1794_v47 = vsel %vm1774_vm7, %v1761_v62, %v2800_v56  ;;  %3082 = vrot.lane.b32.xlu0 %v3791_v0, %s3249_s27  ;;  %v1549_v56 = vsel %vm1543_vm0, %v3475_v38, %v2555_v35  ;;  %v1581_v13 = vsel %vm1576_vm1, %v1548_v22, %v2634_v55 }
  0xf1   : > { %v1816_v14 = vpack.c.bf16 %v1794_v47, %v1793_v20  ;;  %v2808_v26 = vpop.permute.xlu1 %2807  ;;  %v1777_v49 = vsel %vm1774_vm7, %v1744_v29, %v2794_v25  ;;  %v1778_v27 = vsel %vm1774_vm7, %v1745_v30, %v2795_v53  ;;  %v1582_v62 = vsel %vm1576_vm1, %v1549_v56, %v2635_v9 }
  0xf2   : > { %v2803_v60 = vpop.permute.xlu0 %2802  ;;  %v1808_v12 = vpack.c.bf16 %v1778_v27, %v1777_v49  ;;  %v2810_v3 = vunpack.i.h.bf16 %v2808_v26  ;;  %v2809_v46 = vunpack.i.l.bf16 %v2808_v26  ;;  %v1598_v38 = vsel %vm1576_vm1, %v1565_v6, %v2675_v11 }
  0xf3   : > { %3097 = vrot.lane.b32.xlu1 %v3821_v61, %s3251_s29  ;;  %2493 = vmatprep.subr.msk.bf16.mxu0 %vm1837_vm8, %v1816_v14  ;;  %v2805_v63 = vunpack.i.h.bf16 %v2803_v60  ;;  %v2804_v40 = vunpack.i.l.bf16 %v2803_v60  ;;  %v2560_v57 = vunpack.i.h.bf16 %v3548_v54 }
  0xf4   : > { %3092 = vrot.lane.b32.xlu0 %v3823_v2, %s3250_s28  ;;  %2494 = vmatprep.subr.msk.bf16.mxu1 %vm1837_vm8, %v1816_v14  ;;  %v1848_v32 = vsel %vm1837_vm8, %v1808_v12, 0  ;;  %v1631_v47 = vsel %vm1609_vm2, %v1598_v38, %v2810_v3  ;;  %v2415_v38 = vld [vmem:[%s3303_s22 + $0x1a1] sm:$0xff] }
  0xf5   : > { %2458 = vmatpush3.bf16.xpose.msra.mxu0 %v1848_v32  ;;  %2484 = vmatpush3.bf16.xpose.msra.mxu1 %v1848_v32  ;;  %v2818_v10 = vpop.permute.xlu1 %2817  ;;  %v1614_v36 = vsel %vm1609_vm2, %v1581_v13, %v2804_v40  ;;  %v1615_v34 = vsel %vm1609_vm2, %v1582_v62, %v2805_v63 }
  0xf6   : > { %v2813_v45 = vpop.permute.xlu0 %2812  ;;  %v2820_v25 = vunpack.i.h.bf16 %v2818_v10  ;;  %v2819_v29 = vunpack.i.l.bf16 %v2818_v10 }
  0xf7   : > { %3107 = vrot.lane.b32.xlu1 %v3882_v31, %s3252_s30  ;;  %v2814_v16 = vunpack.i.l.bf16 %v2813_v45 }
  0xf8   : > { %3102 = vrot.lane.b32.xlu0 %v3888_v41, %s3251_s29  ;;  %v1664_v32 = vsel %vm1642_vm3, %v1631_v47, %v2820_v25  ;;  %v2399_v47 = vld [vmem:[%s3303_s22 + $0xe1] sm:$0xff] }
  0xf9   : > { %v2828_v52 = vpop.permute.xlu1 %2827  ;;  %v1647_v8 = vsel %vm1642_vm3, %v1614_v36, %v2814_v16 }
  0xfa   : > { %v2823_v19 = vpop.permute.xlu0 %2822  ;;  %v2830_v14 = vunpack.i.h.bf16 %v2828_v52  ;;  %v2829_v26 = vunpack.i.l.bf16 %v2828_v52 }
  0xfb   : > { %3117 = vrot.lane.b32.xlu1 %v3791_v0, %s3246_s24  ;;  %v1564_v0 = vsel %vm1543_vm0, %v3466_v33, %v2594_v7  ;;  %v2815_v33 = vunpack.i.h.bf16 %v2813_v45  ;;  %v2825_v49 = vunpack.i.h.bf16 %v2823_v19  ;;  %v2824_v27 = vunpack.i.l.bf16 %v2823_v19 }
  0xfc   : > { %3112 = vrot.lane.b32.xlu0 %v3901_v1, %s3252_s30  ;;  %v1597_v37 = vsel %vm1576_vm1, %v1564_v0, %v2674_v50  ;;  %v1697_v18 = vsel %vm1675_vm4, %v1664_v32, %v2830_v14  ;;  %v2446_v14 = vld [vmem:[%s3303_s22 + $0x19a] sm:$0xff]  ;;  %v2639_v32 = vunpack.i.l.bf16 %v3611_v21 }
  0xfd   : > { %v2838_v53 = vpop.permute.xlu1 %2837  ;;  %v1630_v20 = vsel %vm1609_vm2, %v1597_v37, %v2809_v46  ;;  %v1648_v45 = vsel %vm1642_vm3, %v1615_v34, %v2815_v33  ;;  %v1680_v55 = vsel %vm1675_vm4, %v1647_v8, %v2824_v27  ;;  %v2414_v37 = vld [vmem:[%s3303_s22 + $0x199] sm:$0xff]  ;;  %v4021_v8 = vld [vmem:[%s4356_s1 + $0x8] sm:$0xff]  }
  0xfe   : > { %v2833_v30 = vpop.permute.xlu0 %2832  ;;  %v2840_v17 = vunpack.i.h.bf16 %v2838_v53  ;;  %v2839_v59 = vunpack.i.l.bf16 %v2838_v53  ;;  %v1663_v12 = vsel %vm1642_vm3, %v1630_v20, %v2819_v29  ;;  %v1681_v52 = vsel %vm1675_vm4, %v1648_v45, %v2825_v49  ;;  %v2398_v20 = vld [vmem:[%s3303_s22 + $0xd9] sm:$0xff]  ;;  %2473 = vmatprep.mubr.msk.bf16.mxu1 %vm1837_vm8, %v4021_v8 }
  0xff   : > { %3127 = vrot.lane.b32.xlu1 %v3823_v2, %s3247_s25  ;;  %v2835_v10 = vunpack.i.h.bf16 %v2833_v30  ;;  %v2834_v2 = vunpack.i.l.bf16 %v2833_v30  ;;  %v3161_v34 = vpack.i.bf16 %v2399_v47, %v2398_v20 }
 0x100   : > { %3122 = vrot.lane.b32.xlu0 %v3817_v24, %s3247_s25  ;;  %v1696_v24 = vsel %vm1675_vm4, %v1663_v12, %v2829_v26  ;;  %v1730_v50 = vsel %vm1708_vm5, %v1697_v18, %v2840_v17  ;;  %v2447_v26 = vld [vmem:[%s3303_s22 + $0x1a2] sm:$0xff]  ;;  %v2599_v17 = vunpack.i.l.bf16 %v3579_v4  ;;  %v2640_v12 = vunpack.i.h.bf16 %v3611_v21 }
 0x101   : > { %v2848_v60 = vpop.permute.xlu1 %2847  ;;  %v1729_v11 = vsel %vm1708_vm5, %v1696_v24, %v2839_v59  ;;  %v1714_v3 = vsel %vm1708_vm5, %v1681_v52, %v2835_v10  ;;  %v3176_v27 = vpack.i.bf16 %v2447_v26, %v2446_v14  ;;  %v3171_v59 = vpack.i.bf16 %v2431_v51, %v2430_v58  ;;  %v2013_v52 = vld [vmem:[%s4357_s2] sm:$0xff] }
 0x102   : > { %v2843_v39 = vpop.permute.xlu0 %2842  ;;  %v2850_v35 = vunpack.i.h.bf16 %v2848_v60  ;;  %v2849_v15 = vunpack.i.l.bf16 %v2848_v60  ;;  %v2600_v60 = vunpack.i.h.bf16 %v3579_v4  ;;  %v1551_v4 = vsel %vm1543_vm0, %v3509_v44, %v2560_v57  ;;  %v4387_v44 = vld [vmem:[#allocation2_spill] sm:$0xff] }
 0x103   : > { %3137 = vrot.lane.b32.xlu1 %v3888_v41, %s3248_s26  ;;  %v2845_v7 = vunpack.i.h.bf16 %v2843_v39  ;;  %v2844_v9 = vunpack.i.l.bf16 %v2843_v39  ;;  %v1713_v41 = vsel %vm1708_vm5, %v1680_v55, %v2834_v2  ;;  %v2679_v2 = vunpack.i.l.bf16 %v3645_v48  ;;  %v2045_v51 = vld [vmem:[%s4358_s3] sm:$0xff] }
 0x104   : > { %3132 = vrot.lane.b32.xlu0 %v3821_v61, %s3248_s26  ;;  %v1762_v61 = vsel %vm1741_vm6, %v1729_v11, %v2849_v15  ;;  %v1763_v63 = vsel %vm1741_vm6, %v1730_v50, %v2850_v35  ;;  %v1567_v18 = vsel %vm1543_vm0, %v4387_v44, %v2600_v60  ;;  %v3253_v55 = vmov 0  }
 0x105   : > { %v2858_v19 = vpop.permute.xlu1 %2857  ;;  %v1746_v6 = vsel %vm1741_vm6, %v1713_v41, %v2844_v9  ;;  %v1747_v13 = vsel %vm1741_vm6, %v1714_v3, %v2845_v7  ;;  %3182 = vset.pattern.permute.xlu1 %v3253_v55  ;;  %3181 = vset.pattern.permute.xlu0 %v3253_v55 }
 0x106   : > { %v2860_v46 = vunpack.i.h.bf16 %v2858_v19  ;;  %v2859_v22 = vunpack.i.l.bf16 %v2858_v19  ;;  %v2853_v56 = vpop.permute.xlu0 %2852 }
 0x107   : > { %v2855_v40 = vunpack.i.h.bf16 %v2853_v56  ;;  %v2854_v0 = vunpack.i.l.bf16 %v2853_v56  ;;  %3147 = vrot.lane.b32.xlu1 %v3901_v1, %s3249_s27 }
 0x108   : > { %v1795_v62 = vsel %vm1774_vm7, %v1762_v61, %v2859_v22  ;;  %v1796_v53 = vsel %vm1774_vm7, %v1763_v63, %v2860_v46  ;;  %3142 = vrot.lane.b32.xlu0 %v3882_v31, %s3249_s27  ;;  %v3166_v31 = vpack.i.bf16 %v2415_v38, %v2414_v37 }
 0x109   : > { %v1817_v25 = vpack.c.bf16 %v1796_v53, %v1795_v62  ;;  %v3974_v29 = vpop.permute.xlu1 %2867  ;;  %v1779_v1 = vsel %vm1774_vm7, %v1746_v6, %v2854_v0  ;;  %v1780_v30 = vsel %vm1774_vm7, %v1747_v13, %v2855_v40  ;;  %v2015_v13 = vld [vmem:[%s4357_s2 + $0x10] sm:$0xff] }
 0x10a   : > { %v3980_v33 = vpop.permute.xlu0 %2862  ;;  %v1809_v16 = vpack.c.bf16 %v1780_v30, %v1779_v1  ;;  %v2870_v35 = vunpack.i.h.bf16 %v3974_v29  ;;  %v2869_v21 = vunpack.i.l.bf16 %v3974_v29  ;;  %v2016_v29 = vld [vmem:[%s4357_s2 + $0x18] sm:$0xff] }
 0x10b   : > { %3157 = vrot.lane.b32.xlu1 %v3156_v23, %s3250_s28  ;;  %2495 = vmatprep.subr.msk.bf16.mxu0 %vm1837_vm8, %v1817_v25  ;;  %v4002_v23 = vld [vmem:[%s4356_s1] sm:$0xff]   ;;  %v2865_v15 = vunpack.i.h.bf16 %v3980_v33  ;;  %v2864_v24 = vunpack.i.l.bf16 %v3980_v33 }
 0x10c   : > { %3152 = vrot.lane.b32.xlu0 %v3151_v5, %s3250_s28  ;;  %2496 = vmatprep.subr.msk.bf16.mxu1 %vm1837_vm8, %v1817_v25  ;;  %v1851_v36 = vsel %vm1837_vm8, %v1809_v16, 0  ;;  %v2559_v5 = vunpack.i.l.bf16 %v3548_v54  ;;  %v2680_v54 = vunpack.i.h.bf16 %v3645_v48  ;;  %v1566_v48 = vsel %vm1543_vm0, %v3500_v28, %v2599_v17 }
 0x10d   : > { %2460 = vmatpush3.bf16.xpose.msra.mxu0 %v1851_v36  ;;  %2485 = vmatpush3.bf16.xpose.msra.mxu1 %v1851_v36  ;;  %v3995_v49 = vpop.permute.xlu1 %2877  ;;  %v1584_v28 = vsel %vm1576_vm1, %v1551_v4, %v2640_v12  ;;  %v1599_v11 = vsel %vm1576_vm1, %v1566_v48, %v2679_v2 }
 0x10e   : > { %v4004_v42 = vpop.permute.xlu0 %2872  ;;  %2471 = vmatprep.mubr.msk.bf16.mxu0 %vm1837_vm8, %v4002_v23  ;;  %v1550_v45 = vsel %vm1543_vm0, %v3506_v43, %v2559_v5  ;;  %v2014_v43 = vld [vmem:[%s4357_s2 + $0x8] sm:$0xff]  ;;  %v1600_v50 = vsel %vm1576_vm1, %v1567_v18, %v2680_v54  ;;  %v2880_v19 = vunpack.i.h.bf16 %v3995_v49  ;;  %v2879_v41 = vunpack.i.l.bf16 %v3995_v49 }
 0x10f   : > { %3167 = vrot.lane.b32.xlu1 %v3166_v31, %s3251_s29  ;;  %v1583_v7 = vsel %vm1576_vm1, %v1550_v45, %v2639_v32  ;;  %v1632_v46 = vsel %vm1609_vm2, %v1599_v11, %v2869_v21  ;;  %v1633_v22 = vsel %vm1609_vm2, %v1600_v50, %v2870_v35  ;;  %v2875_v56 = vunpack.i.h.bf16 %v4004_v42 }
 0x110   : > { %3162 = vrot.lane.b32.xlu0 %v3161_v34, %s3251_s29  ;;  %v2874_v61 = vunpack.i.l.bf16 %v4004_v42  ;;  %v1616_v63 = vsel %vm1609_vm2, %v1583_v7, %v2864_v24  ;;  %v1617_v40 = vsel %vm1609_vm2, %v1584_v28, %v2865_v15  ;;  %v1665_v1 = vsel %vm1642_vm3, %v1632_v46, %v2879_v41  ;;  %v2047_v7 = vld [vmem:[%s4358_s3 + $0x10] sm:$0xff]  ;;  %v2048_v28 = vld [vmem:[%s4358_s3 + $0x18] sm:$0xff] }
 0x111   : > { %v2888_v10 = vpop.permute.xlu1 %2887  ;;  %v1666_v30 = vsel %vm1642_vm3, %v1633_v22, %v2880_v19  ;;  %v1650_v31 = vsel %vm1642_vm3, %v1617_v40, %v2875_v56  ;;  %v4389_v56 = vld [vmem:[#allocation8_spill] sm:$0xff] }
 0x112   : > { %v2883_v39 = vpop.permute.xlu0 %2882  ;;  %v2890_v0 = vunpack.i.h.bf16 %v2888_v10  ;;  %v2889_v6 = vunpack.i.l.bf16 %v2888_v10  ;;  %v1649_v16 = vsel %vm1642_vm3, %v1616_v63, %v2874_v61  ;;  %v2605_v61 = vunpack.i.h.bf16 %v4389_v56  ;;  %v4390_v40 = vld [vmem:[#allocation12_spill] sm:$0xff] }
 0x113   : > { %3177 = vrot.lane.b32.xlu1 %v3176_v27, %s3252_s30  ;;  %v2885_v62 = vunpack.i.h.bf16 %v2883_v39  ;;  %v2884_v53 = vunpack.i.l.bf16 %v2883_v39  ;;  %v2604_v63 = vunpack.i.l.bf16 %v4389_v56 }
 0x114   : > { %3172 = vrot.lane.b32.xlu0 %v3171_v59, %s3252_s30  ;;  %v1698_v14 = vsel %vm1675_vm4, %v1665_v1, %v2889_v6  ;;  %v1699_v26 = vsel %vm1675_vm4, %v1666_v30, %v2890_v0  ;;  %v2046_v59 = vld [vmem:[%s4358_s3 + $0x8] sm:$0xff]  ;;  %v2645_v0 = vunpack.i.h.bf16 %v4390_v40  ;;  %v2644_v6 = vunpack.i.l.bf16 %v4390_v40 }
 0x115   : > { %v2898_v9 = vpop.permute.xlu1 %2897  ;;  %v1682_v42 = vsel %vm1675_vm4, %v1649_v16, %v2884_v53  ;;  %v1683_v57 = vsel %vm1675_vm4, %v1650_v31, %v2885_v62  ;;  %v3206_v30 = vld [vmem:[%s3303_s22 + $0x68] sm:$0xff]  ;;  %v3207_v16 = vld [vmem:[%s3303_s22 + $0x120] sm:$0xff] }
 0x116   : > { %v2893_v3 = vpop.permute.xlu0 %2892  ;;  %v2900_v37 = vunpack.i.h.bf16 %v2898_v9  ;;  %v2899_v38 = vunpack.i.l.bf16 %v2898_v9  ;;  %v1568_v31 = vsel %vm1543_vm0, %v3207_v16, %v2604_v63 }
 0x117   : > { %2024 = vperm.xlu1 %3182, %v2014_v43   ;;  %v2895_v20 = vunpack.i.h.bf16 %v2893_v3  ;;  %v2894_v47 = vunpack.i.l.bf16 %v2893_v3  ;;  %v4388_v3 = vld [vmem:[#allocation4_spill] sm:$0xff] }
 0x118   : > { %2019 = vperm.xlu0 %3181, %v2013_v52   ;;  %v1731_v5 = vsel %vm1708_vm5, %v1698_v14, %v2899_v38  ;;  %v1732_v27 = vsel %vm1708_vm5, %v1699_v26, %v2900_v37  ;;  %v2565_v46 = vunpack.i.h.bf16 %v4388_v3  ;;  %v2564_v22 = vunpack.i.l.bf16 %v4388_v3 }
 0x119   : > { %v2908_v25 = vpop.permute.xlu1 %2907  ;;  %v1715_v60 = vsel %vm1708_vm5, %v1682_v42, %v2894_v47  ;;  %v1716_v12 = vsel %vm1708_vm5, %v1683_v57, %v2895_v20 }
 0x11a   : > { %v2903_v33 = vpop.permute.xlu0 %2902  ;;  %v2910_v36 = vunpack.i.h.bf16 %v2908_v25  ;;  %v2909_v34 = vunpack.i.l.bf16 %v2908_v25  ;;  %v1553_v20 = vsel %vm1543_vm0, %v3206_v30, %v2565_v46 }
 0x11b   : > { %2029 = vperm.xlu1 %3182, %v2015_v13   ;;  %v2905_v49 = vunpack.i.h.bf16 %v2903_v33  ;;  %v2904_v58 = vunpack.i.l.bf16 %v2903_v33 }
 0x11c   : > { %2034 = vperm.xlu0 %3181, %v2016_v29   ;;  %v1764_v2 = vsel %vm1741_vm6, %v1731_v5, %v2909_v34  ;;  %v1765_v39 = vsel %vm1741_vm6, %v1732_v27, %v2910_v36  ;;  %v3205_v29 = vld [vmem:[%s3303_s22 + $0x60] sm:$0xff]  ;;  %v3208_v36 = vld [vmem:[%s3303_s22 + $0x128] sm:$0xff] }
 0x11d   : > { %v2918_v17 = vpop.permute.xlu1 %2917  ;;  %v1748_v35 = vsel %vm1741_vm6, %v1715_v60, %v2904_v58  ;;  %v1749_v21 = vsel %vm1741_vm6, %v1716_v12, %v2905_v49  ;;  %v1552_v1 = vsel %vm1543_vm0, %v3205_v29, %v2564_v22  ;;  %v1569_v34 = vsel %vm1543_vm0, %v3208_v36, %v2605_v61 }
 0x11e   : > { %v2920_v32 = vunpack.i.h.bf16 %v2918_v17  ;;  %v2919_v10 = vunpack.i.l.bf16 %v2918_v17  ;;  %v2913_v54 = vpop.permute.xlu0 %2912  ;;  %v1585_v49 = vsel %vm1576_vm1, %v1552_v1, %v2644_v6  ;;  %v1586_v58 = vsel %vm1576_vm1, %v1553_v20, %v2645_v0 }
 0x11f   : > { %v2915_v45 = vunpack.i.h.bf16 %v2913_v54  ;;  %v2914_v4 = vunpack.i.l.bf16 %v2913_v54  ;;  %2051 = vperm.xlu1 %3182, %v2045_v51  }
 0x120   : > { %v1797_v48 = vsel %vm1774_vm7, %v1764_v2, %v2919_v10  ;;  %v1798_v15 = vsel %vm1774_vm7, %v1765_v39, %v2920_v32  ;;  %2056 = vperm.xlu0 %3181, %v2046_v59  }
 0x121   : > { %v1818_v24 = vpack.c.bf16 %v1798_v15, %v1797_v48  ;;  %v2928_v43 = vpop.permute.xlu1 %2927  ;;  %v1781_v44 = vsel %vm1774_vm7, %v1748_v35, %v2914_v4  ;;  %v1782_v18 = vsel %vm1774_vm7, %v1749_v21, %v2915_v45 }
 0x122   : > { %v2923_v9 = vpop.permute.xlu0 %2922  ;;  %v1810_v55 = vpack.c.bf16 %v1782_v18, %v1781_v44  ;;  %v2930_v62 = vunpack.i.h.bf16 %v2928_v43  ;;  %v2929_v53 = vunpack.i.l.bf16 %v2928_v43 }
 0x123   : > { %2497 = vmatprep.subr.msk.bf16.mxu0 %vm1837_vm8, %v1818_v24  ;;  %2498 = vmatprep.subr.msk.bf16.mxu1 %vm1837_vm8, %v1818_v24  ;;  %v2925_v37 = vunpack.i.h.bf16 %v2923_v9  ;;  %v2924_v38 = vunpack.i.l.bf16 %v2923_v9 }
 0x124   : > { %v1854_v52 = vsel %vm1837_vm8, %v1810_v55, 0  ;;  %2061 = vperm.xlu1 %3182, %v2047_v7   ;;  %2066 = vperm.xlu0 %3181, %v2048_v28   ;;  %v1618_v5 = vsel %vm1609_vm2, %v1585_v49, %v2929_v53  ;;  %v1619_v27 = vsel %vm1609_vm2, %v1586_v58, %v2930_v62  ;;  %v4392_v49 = vld [vmem:[#allocation7_spill] sm:$0xff] }
 0x125   : > { %2462 = vmatpush3.bf16.xpose.msra.mxu0 %v1854_v52  ;;  %2486 = vmatpush3.bf16.xpose.msra.mxu1 %v1854_v52  ;;  %v2938_v11 = vpop.permute.xlu1 %2937  ;;  %v1601_v17 = vsel %vm1576_vm1, %v1568_v31, %v2924_v38  ;;  %v1602_v59 = vsel %vm1576_vm1, %v1569_v34, %v2925_v37  ;;  %v4391_v34 = vld [vmem:[#allocation3_spill] sm:$0xff]  ;;  %v2610_v58 = vunpack.i.h.bf16 %v4392_v49 }
 0x126   : > { %v2933_v50 = vpop.permute.xlu0 %2932  ;;  %v2940_v47 = vunpack.i.h.bf16 %v2938_v11  ;;  %v2939_v33 = vunpack.i.l.bf16 %v2938_v11 }
 0x127   : > { %v2935_v14 = vunpack.i.h.bf16 %v2933_v50  ;;  %v2934_v26 = vunpack.i.l.bf16 %v2933_v50 }
 0x128   : > { %v1651_v12 = vsel %vm1642_vm3, %v1618_v5, %v2939_v33  ;;  %v1652_v32 = vsel %vm1642_vm3, %v1619_v27, %v2940_v47 }
 0x129   : > { %v2948_v19 = vpop.permute.xlu1 %2947  ;;  %v1634_v2 = vsel %vm1609_vm2, %v1601_v17, %v2934_v26  ;;  %v1635_v39 = vsel %vm1609_vm2, %v1602_v59, %v2935_v14  ;;  %v2570_v14 = vunpack.i.h.bf16 %v4391_v34  ;;  %v2569_v26 = vunpack.i.l.bf16 %v4391_v34 }
 0x12a   : > { %v4098_v41 = vpop.permute.xlu0 %2942  ;;  %v2950_v51 = vunpack.i.h.bf16 %v2948_v19  ;;  %v2949_v42 = vunpack.i.l.bf16 %v2948_v19 }
 0x12b   : > { %v2945_v48 = vunpack.i.h.bf16 %v4098_v41  ;;  %v2944_v15 = vunpack.i.l.bf16 %v4098_v41 }
 0x12c   : > { %v1684_v35 = vsel %vm1675_vm4, %v1651_v12, %v2949_v42  ;;  %v1685_v21 = vsel %vm1675_vm4, %v1652_v32, %v2950_v51  ;;  %v2609_v51 = vunpack.i.l.bf16 %v4392_v49  ;;  %v4393_v42 = vld [vmem:[#allocation11_spill] sm:$0xff] }
 0x12d   : > { %v2958_v13 = vpop.permute.xlu1 %2957  ;;  %v1667_v41 = vsel %vm1642_vm3, %v1634_v2, %v2944_v15  ;;  %v1668_v22 = vsel %vm1642_vm3, %v1635_v39, %v2945_v48  ;;  %v2649_v5 = vunpack.i.l.bf16 %v4393_v42  ;;  %v3210_v2 = vld [vmem:[%s3303_s22 + $0x80] sm:$0xff] }
 0x12e   : > { %v2953_v25 = vpop.permute.xlu0 %2952  ;;  %v2960_v10 = vunpack.i.h.bf16 %v2958_v13  ;;  %v2959_v54 = vunpack.i.l.bf16 %v2958_v13  ;;  %v1555_v39 = vsel %vm1543_vm0, %v3210_v2, %v2570_v14  ;;  %v3212_v48 = vld [vmem:[%s3303_s22 + $0x140] sm:$0xff] }
 0x12f   : > { %v2955_v43 = vunpack.i.h.bf16 %v2953_v25  ;;  %v2954_v44 = vunpack.i.l.bf16 %v2953_v25  ;;  %v1571_v15 = vsel %vm1543_vm0, %v3212_v48, %v2610_v58 }
 0x130   : > { %v1717_v9 = vsel %vm1708_vm5, %v1684_v35, %v2959_v54  ;;  %v1718_v55 = vsel %vm1708_vm5, %v1685_v21, %v2960_v10  ;;  %v3209_v10 = vld [vmem:[%s3303_s22 + $0x78] sm:$0xff] }
 0x131   : > { %v2968_v57 = vpop.permute.xlu1 %2967  ;;  %v1700_v40 = vsel %vm1675_vm4, %v1667_v41, %v2954_v44  ;;  %v1701_v0 = vsel %vm1675_vm4, %v1668_v22, %v2955_v43  ;;  %v1554_v54 = vsel %vm1543_vm0, %v3209_v10, %v2569_v26  ;;  %v3211_v35 = vld [vmem:[%s3303_s22 + $0x138] sm:$0xff] }
 0x132   : > { %v2963_v60 = vpop.permute.xlu0 %2962  ;;  %v2970_v45 = vunpack.i.h.bf16 %v2968_v57  ;;  %v2969_v4 = vunpack.i.l.bf16 %v2968_v57  ;;  %v2650_v57 = vunpack.i.h.bf16 %v4393_v42  ;;  %v1570_v21 = vsel %vm1543_vm0, %v3211_v35, %v2609_v51 }
 0x133   : > { %v2965_v52 = vunpack.i.h.bf16 %v2963_v60  ;;  %v2964_v11 = vunpack.i.l.bf16 %v2963_v60 }
 0x134   : > { %v1750_v50 = vsel %vm1741_vm6, %v1717_v9, %v2969_v4  ;;  %v1751_v19 = vsel %vm1741_vm6, %v1718_v55, %v2970_v45  ;;  %v1588_v43 = vsel %vm1576_vm1, %v1555_v39, %v2650_v57 }
 0x135   : > { %v2978_v24 = vpop.permute.xlu1 %2977  ;;  %v1733_v13 = vsel %vm1708_vm5, %v1700_v40, %v2964_v11  ;;  %v1734_v62 = vsel %vm1708_vm5, %v1701_v0, %v2965_v52 }
 0x136   : > { %v2980_v18 = vunpack.i.h.bf16 %v2978_v24  ;;  %v2979_v7 = vunpack.i.l.bf16 %v2978_v24  ;;  %v2973_v28 = vpop.permute.xlu0 %2972  ;;  %v1587_v24 = vsel %vm1576_vm1, %v1554_v54, %v2649_v5 }
 0x137   : > { %v2975_v3 = vunpack.i.h.bf16 %v2973_v28  ;;  %v2974_v46 = vunpack.i.l.bf16 %v2973_v28 }
 0x138   : > { %v1783_v61 = vsel %vm1774_vm7, %v1750_v50, %v2979_v7  ;;  %v1784_v63 = vsel %vm1774_vm7, %v1751_v19, %v2980_v18 }
 0x139   : > { %v2988_v56 = vpop.permute.xlu1 %2987  ;;  %v1766_v38 = vsel %vm1741_vm6, %v1733_v13, %v2974_v46  ;;  %v1767_v25 = vsel %vm1741_vm6, %v1734_v62, %v2975_v3  ;;  %v1811_v29 = vpack.c.bf16 %v1784_v63, %v1783_v61 }
 0x13a   : > { %v2983_v6 = vpop.permute.xlu0 %2982  ;;  %v2990_v17 = vunpack.i.h.bf16 %v2988_v56  ;;  %v2989_v59 = vunpack.i.l.bf16 %v2988_v56 }
 0x13b   : > { %v2985_v53 = vunpack.i.h.bf16 %v2983_v6  ;;  %v2984_v37 = vunpack.i.l.bf16 %v2983_v6  ;;  %v1857_v16 = vsel %vm1837_vm8, %v1811_v29, 0 }
 0x13c   : > { %v1603_v18 = vsel %vm1576_vm1, %v1570_v21, %v2989_v59  ;;  %v1604_v7 = vsel %vm1576_vm1, %v1571_v15, %v2990_v17 }
 0x13d   : > { %v1799_v1 = vsel %vm1774_vm7, %v1766_v38, %v2984_v37  ;;  %v1800_v30 = vsel %vm1774_vm7, %v1767_v25, %v2985_v53  ;;  %v2998_v20 = vpop.permute.xlu1 %2997 }
 0x13e   : > { %v1819_v47 = vpack.c.bf16 %v1800_v30, %v1799_v1  ;;  %v2993_v33 = vpop.permute.xlu0 %2992  ;;  %v3000_v12 = vunpack.i.h.bf16 %v2998_v20  ;;  %v2999_v32 = vunpack.i.l.bf16 %v2998_v20 }
 0x13f   : > { %v2995_v45 = vunpack.i.h.bf16 %v2993_v33  ;;  %v2994_v4 = vunpack.i.l.bf16 %v2993_v33 }
 0x140   : > { %2499 = vmatprep.subr.msk.bf16.mxu0 %vm1837_vm8, %v1819_v47  ;;  %2500 = vmatprep.subr.msk.bf16.mxu1 %vm1837_vm8, %v1819_v47  ;;  %v1636_v52 = vsel %vm1609_vm2, %v1603_v18, %v2999_v32  ;;  %v1637_v11 = vsel %vm1609_vm2, %v1604_v7, %v3000_v12  ;;  %v4395_v7 = vld [vmem:[#allocation10_spill] sm:$0xff] }
 0x141   : > { %2464 = vmatpush3.bf16.xpose.msra.mxu0 %v1857_v16  ;;  %2487 = vmatpush3.bf16.xpose.msra.mxu1 %v1857_v16  ;;  %v3008_v31 = vpop.permute.xlu1 %3007  ;;  %v1620_v3 = vsel %vm1609_vm2, %v1587_v24, %v2994_v4  ;;  %v1621_v46 = vsel %vm1609_vm2, %v1588_v43, %v2995_v45  ;;  %v4394_v43 = vld [vmem:[#allocation6_spill] sm:$0xff] }
 0x142   : > { %v3003_v36 = vpop.permute.xlu0 %3002  ;;  %v3010_v28 = vunpack.i.h.bf16 %v3008_v31  ;;  %v3009_v9 = vunpack.i.l.bf16 %v3008_v31  ;;  %v2574_v18 = vunpack.i.l.bf16 %v4394_v43 }
 0x143   : > { %v3005_v50 = vunpack.i.h.bf16 %v3003_v36  ;;  %v3004_v19 = vunpack.i.l.bf16 %v3003_v36 }
 0x144   : > { %v1669_v6 = vsel %vm1642_vm3, %v1636_v52, %v3009_v9  ;;  %v1670_v13 = vsel %vm1642_vm3, %v1637_v11, %v3010_v28  ;;  %v2615_v28 = vunpack.i.h.bf16 %v4395_v7  ;;  %v2614_v9 = vunpack.i.l.bf16 %v4395_v7 }
 0x145   : > { %v3018_v27 = vpop.permute.xlu1 %3017  ;;  %v1653_v38 = vsel %vm1642_vm3, %v1620_v3, %v3004_v19  ;;  %v1654_v25 = vsel %vm1642_vm3, %v1621_v46, %v3005_v50 }
 0x146   : > { %v3013_v60 = vpop.permute.xlu0 %3012  ;;  %v3020_v41 = vunpack.i.h.bf16 %v3018_v27  ;;  %v3019_v22 = vunpack.i.l.bf16 %v3018_v27 }
 0x147   : > { %v3015_v56 = vunpack.i.h.bf16 %v3013_v60  ;;  %v3014_v61 = vunpack.i.l.bf16 %v3013_v60 }
 0x148   : > { %v1702_v30 = vsel %vm1675_vm4, %v1669_v6, %v3019_v22  ;;  %v1703_v20 = vsel %vm1675_vm4, %v1670_v13, %v3020_v41  ;;  %v3215_v13 = vld [vmem:[%s3303_s22 + $0x150] sm:$0xff] }
 0x149   : > { %v3028_v44 = vpop.permute.xlu1 %3027  ;;  %v1686_v16 = vsel %vm1675_vm4, %v1653_v38, %v3014_v61  ;;  %v1687_v31 = vsel %vm1675_vm4, %v1654_v25, %v3015_v56  ;;  %v3213_v56 = vld [vmem:[%s3303_s22 + $0x90] sm:$0xff] }
 0x14a   : > { %v3023_v55 = vpop.permute.xlu0 %3022  ;;  %v3030_v63 = vunpack.i.h.bf16 %v3028_v44  ;;  %v3029_v40 = vunpack.i.l.bf16 %v3028_v44  ;;  %v2575_v44 = vunpack.i.h.bf16 %v4394_v43  ;;  %v1556_v61 = vsel %vm1543_vm0, %v3213_v56, %v2574_v18 }
 0x14b   : > { %v3025_v62 = vunpack.i.h.bf16 %v3023_v55  ;;  %v3024_v53 = vunpack.i.l.bf16 %v3023_v55  ;;  %v4396_v55 = vld [vmem:[#allocation14_spill] sm:$0xff] }
 0x14c   : > { %v1735_v36 = vsel %vm1708_vm5, %v1702_v30, %v3029_v40  ;;  %v1736_v34 = vsel %vm1708_vm5, %v1703_v20, %v3030_v63  ;;  %v2655_v52 = vunpack.i.h.bf16 %v4396_v55  ;;  %v2654_v11 = vunpack.i.l.bf16 %v4396_v55  ;;  %v3214_v63 = vld [vmem:[%s3303_s22 + $0x98] sm:$0xff] }
 0x14d   : > { %v3038_v0 = vpop.permute.xlu1 %3037  ;;  %v1719_v26 = vsel %vm1708_vm5, %v1686_v16, %v3024_v53  ;;  %v1720_v49 = vsel %vm1708_vm5, %v1687_v31, %v3025_v62  ;;  %v1557_v40 = vsel %vm1543_vm0, %v3214_v63, %v2575_v44  ;;  %v1572_v62 = vsel %vm1543_vm0, %v3215_v13, %v2614_v9  ;;  %v3216_v53 = vld [vmem:[%s3303_s22 + $0x158] sm:$0xff] }
 0x14e   : > { %v3033_v37 = vpop.permute.xlu0 %3032  ;;  %v3040_v29 = vunpack.i.h.bf16 %v3038_v0  ;;  %v3039_v1 = vunpack.i.l.bf16 %v3038_v0 }
 0x14f   : > { %v3035_v47 = vunpack.i.h.bf16 %v3033_v37  ;;  %v3034_v33 = vunpack.i.l.bf16 %v3033_v37  ;;  %v1573_v37 = vsel %vm1543_vm0, %v3216_v53, %v2615_v28 }
 0x150   : > { %v1768_v57 = vsel %vm1741_vm6, %v1735_v36, %v3039_v1  ;;  %v1769_v5 = vsel %vm1741_vm6, %v1736_v34, %v3040_v29  ;;  %v1589_v29 = vsel %vm1576_vm1, %v1556_v61, %v2654_v11  ;;  %v1590_v1 = vsel %vm1576_vm1, %v1557_v40, %v2655_v52 }
 0x151   : > { %v3048_v14 = vpop.permute.xlu1 %3047  ;;  %v1752_v59 = vsel %vm1741_vm6, %v1719_v26, %v3034_v33  ;;  %v1753_v60 = vsel %vm1741_vm6, %v1720_v49, %v3035_v47 }
 0x152   : > { %v3050_v58 = vunpack.i.h.bf16 %v3048_v14  ;;  %v3049_v51 = vunpack.i.l.bf16 %v3048_v14  ;;  %v3043_v42 = vpop.permute.xlu0 %3042 }
 0x153   : > { %v3045_v27 = vunpack.i.h.bf16 %v3043_v42  ;;  %v3044_v17 = vunpack.i.l.bf16 %v3043_v42 }
 0x154   : > { %v1801_v12 = vsel %vm1774_vm7, %v1768_v57, %v3049_v51  ;;  %v1802_v32 = vsel %vm1774_vm7, %v1769_v5, %v3050_v58 }
 0x155   : > { %v1820_v10 = vpack.c.bf16 %v1802_v32, %v1801_v12  ;;  %v3058_v54 = vpop.permute.xlu1 %3057  ;;  %v1785_v2 = vsel %vm1774_vm7, %v1752_v59, %v3044_v17  ;;  %v1786_v39 = vsel %vm1774_vm7, %v1753_v60, %v3045_v27 }
 0x156   : > { %v3053_v45 = vpop.permute.xlu0 %3052  ;;  %v1812_v4 = vpack.c.bf16 %v1786_v39, %v1785_v2  ;;  %v3060_v19 = vunpack.i.h.bf16 %v3058_v54  ;;  %v3059_v3 = vunpack.i.l.bf16 %v3058_v54 }
 0x157   : > { %2501 = vmatprep.subr.msk.bf16.mxu0 %vm1837_vm8, %v1820_v10  ;;  %2502 = vmatprep.subr.msk.bf16.mxu1 %vm1837_vm8, %v1820_v10  ;;  %v3055_v46 = vunpack.i.h.bf16 %v3053_v45  ;;  %v3054_v41 = vunpack.i.l.bf16 %v3053_v45 }
 0x158   : > { %v1860_v35 = vsel %vm1837_vm8, %v1812_v4, 0  ;;  %v1622_v33 = vsel %vm1609_vm2, %v1589_v29, %v3059_v3  ;;  %v1623_v16 = vsel %vm1609_vm2, %v1590_v1, %v3060_v19  ;;  %v4398_v29 = vld [vmem:[#allocation9_spill] sm:$0xff] }
 0x159   : > { %2466 = vmatpush3.bf16.xpose.msra.mxu0 %v1860_v35  ;;  %2488 = vmatpush3.bf16.xpose.msra.mxu1 %v1860_v35  ;;  %v3068_v21 = vpop.permute.xlu1 %3067  ;;  %v1605_v31 = vsel %vm1576_vm1, %v1572_v62, %v3054_v41  ;;  %v1606_v36 = vsel %vm1576_vm1, %v1573_v37, %v3055_v46  ;;  %v4397_v37 = vld [vmem:[#allocation5_spill] sm:$0xff]  ;;  %v2620_v1 = vunpack.i.h.bf16 %v4398_v29 }
 0x15a   : > { %v3063_v48 = vpop.permute.xlu0 %3062  ;;  %v3070_v0 = vunpack.i.h.bf16 %v3068_v21  ;;  %v3069_v6 = vunpack.i.l.bf16 %v3068_v21 }
 0x15b   : > { %v3065_v38 = vunpack.i.h.bf16 %v3063_v48  ;;  %v3064_v25 = vunpack.i.l.bf16 %v3063_v48 }
 0x15c   : > { %v1655_v14 = vsel %vm1642_vm3, %v1622_v33, %v3069_v6  ;;  %v1656_v26 = vsel %vm1642_vm3, %v1623_v16, %v3070_v0 }
 0x15d   : > { %v3078_v15 = vpop.permute.xlu1 %3077  ;;  %v1638_v51 = vsel %vm1609_vm2, %v1605_v31, %v3064_v25  ;;  %v1639_v42 = vsel %vm1609_vm2, %v1606_v36, %v3065_v38  ;;  %v2580_v38 = vunpack.i.h.bf16 %v4397_v37  ;;  %v2579_v25 = vunpack.i.l.bf16 %v4397_v37 }
 0x15e   : > { %v4192_v24 = vpop.permute.xlu0 %3072  ;;  %v3080_v30 = vunpack.i.h.bf16 %v3078_v15  ;;  %v3079_v20 = vunpack.i.l.bf16 %v3078_v15 }
 0x15f   : > { %v3075_v59 = vunpack.i.h.bf16 %v4192_v24  ;;  %v3074_v60 = vunpack.i.l.bf16 %v4192_v24 }
 0x160   : > { %v1688_v27 = vsel %vm1675_vm4, %v1655_v14, %v3079_v20  ;;  %v1689_v17 = vsel %vm1675_vm4, %v1656_v26, %v3080_v30  ;;  %v2619_v30 = vunpack.i.l.bf16 %v4398_v29  ;;  %v4399_v20 = vld [vmem:[#allocation13_spill] sm:$0xff] }
 0x161   : > { %v3088_v50 = vpop.permute.xlu1 %3087  ;;  %v1671_v24 = vsel %vm1642_vm3, %v1638_v51, %v3074_v60  ;;  %v1672_v18 = vsel %vm1642_vm3, %v1639_v42, %v3075_v59  ;;  %v2659_v33 = vunpack.i.l.bf16 %v4399_v20  ;;  %v3218_v51 = vld [vmem:[%s3303_s22 + $0xb0] sm:$0xff] }
 0x162   : > { %v3083_v22 = vpop.permute.xlu0 %3082  ;;  %v3090_v49 = vunpack.i.h.bf16 %v3088_v50  ;;  %v3089_v58 = vunpack.i.l.bf16 %v3088_v50  ;;  %v1559_v42 = vsel %vm1543_vm0, %v3218_v51, %v2580_v38  ;;  %v3220_v59 = vld [vmem:[%s3303_s22 + $0x170] sm:$0xff] }
 0x163   : > { %v3085_v32 = vunpack.i.h.bf16 %v3083_v22  ;;  %v3084_v10 = vunpack.i.l.bf16 %v3083_v22  ;;  %v1575_v60 = vsel %vm1543_vm0, %v3220_v59, %v2620_v1 }
 0x164   : > { %v1721_v45 = vsel %vm1708_vm5, %v1688_v27, %v3089_v58  ;;  %v1722_v4 = vsel %vm1708_vm5, %v1689_v17, %v3090_v49  ;;  %v3217_v49 = vld [vmem:[%s3303_s22 + $0xa8] sm:$0xff] }
 0x165   : > { %v3098_v47 = vpop.permute.xlu1 %3097  ;;  %v1704_v55 = vsel %vm1675_vm4, %v1671_v24, %v3084_v10  ;;  %v1705_v52 = vsel %vm1675_vm4, %v1672_v18, %v3085_v32  ;;  %v1558_v58 = vsel %vm1543_vm0, %v3217_v49, %v2579_v25  ;;  %v3219_v27 = vld [vmem:[%s3303_s22 + $0x168] sm:$0xff]  ;;  %s2454_s22 = sshll.u32 %s4405_s15, 6 }
 0x166   : > { %v3093_v34 = vpop.permute.xlu0 %3092  ;;  %v3100_v57 = vunpack.i.h.bf16 %v3098_v47  ;;  %v3099_v5 = vunpack.i.l.bf16 %v3098_v47  ;;  %v2660_v47 = vunpack.i.h.bf16 %v4399_v20  ;;  %v1574_v17 = vsel %vm1543_vm0, %v3219_v27, %v2619_v30  ;;  %s4330_s6 = scalar_lea.vmem %s4359_s4, %s2454_s22 }
 0x167   : > { %v3095_v35 = vunpack.i.h.bf16 %v3093_v34  ;;  %v3094_v21 = vunpack.i.l.bf16 %v3093_v34 }
 0x168   : > { %v1754_v48 = vsel %vm1741_vm6, %v1721_v45, %v3099_v5  ;;  %v1755_v15 = vsel %vm1741_vm6, %v1722_v4, %v3100_v57  ;;  %v1592_v32 = vsel %vm1576_vm1, %v1559_v42, %v2660_v47 }
 0x169   : > { %v3108_v12 = vpop.permute.xlu1 %3107  ;;  %v1737_v50 = vsel %vm1708_vm5, %v1704_v55, %v3094_v21  ;;  %v1738_v19 = vsel %vm1708_vm5, %v1705_v52, %v3095_v35 }
 0x16a   : > { %v3110_v54 = vunpack.i.h.bf16 %v3108_v12  ;;  %v3109_v2 = vunpack.i.l.bf16 %v3108_v12  ;;  %v3103_v39 = vpop.permute.xlu0 %3102  ;;  %v1591_v12 = vsel %vm1576_vm1, %v1558_v58, %v2659_v33 }
 0x16b   : > { %v3105_v43 = vunpack.i.h.bf16 %v3103_v39  ;;  %v3104_v44 = vunpack.i.l.bf16 %v3103_v39 }
 0x16c   : > { %v1787_v28 = vsel %vm1774_vm7, %v1754_v48, %v3109_v2  ;;  %v1788_v9 = vsel %vm1774_vm7, %v1755_v15, %v3110_v54 }
 0x16d   : > { %v3118_v7 = vpop.permute.xlu1 %3117  ;;  %v1770_v41 = vsel %vm1741_vm6, %v1737_v50, %v3104_v44  ;;  %v1771_v22 = vsel %vm1741_vm6, %v1738_v19, %v3105_v43  ;;  %v1813_v56 = vpack.c.bf16 %v1788_v9, %v1787_v28 }
 0x16e   : > { %v3113_v11 = vpop.permute.xlu0 %3112  ;;  %v3120_v31 = vunpack.i.h.bf16 %v3118_v7  ;;  %v3119_v36 = vunpack.i.l.bf16 %v3118_v7 }
 0x16f   : > { %v3115_v3 = vunpack.i.h.bf16 %v3113_v11  ;;  %v3114_v46 = vunpack.i.l.bf16 %v3113_v11  ;;  %v1863_v13 = vsel %vm1837_vm8, %v1813_v56, 0 }
 0x170   : > { %v1607_v54 = vsel %vm1576_vm1, %v1574_v17, %v3119_v36  ;;  %v1608_v2 = vsel %vm1576_vm1, %v1575_v60, %v3120_v31 }
 0x171   : > { %v1803_v61 = vsel %vm1774_vm7, %v1770_v41, %v3114_v46  ;;  %v1804_v63 = vsel %vm1774_vm7, %v1771_v22, %v3115_v3  ;;  %v3128_v40 = vpop.permute.xlu1 %3127 }
 0x172   : > { %v1821_v0 = vpack.c.bf16 %v1804_v63, %v1803_v61  ;;  %v3123_v6 = vpop.permute.xlu0 %3122  ;;  %v3130_v14 = vunpack.i.h.bf16 %v3128_v40  ;;  %v3129_v26 = vunpack.i.l.bf16 %v3128_v40 }
 0x173   : > { %v3125_v57 = vunpack.i.h.bf16 %v3123_v6  ;;  %v3124_v5 = vunpack.i.l.bf16 %v3123_v6 }
 0x174   : > { %2503 = vmatprep.subr.msk.bf16.mxu0 %vm1837_vm8, %v1821_v0  ;;  %2504 = vmatprep.subr.msk.bf16.mxu1 %vm1837_vm8, %v1821_v0  ;;  %v1640_v35 = vsel %vm1609_vm2, %v1607_v54, %v3129_v26  ;;  %v1641_v21 = vsel %vm1609_vm2, %v1608_v2, %v3130_v14 }
 0x175   : > { %2468 = vmatpush3.bf16.xpose.msra.mxu0 %v1863_v13  ;;  %2489 = vmatpush3.bf16.xpose.msra.mxu1 %v1863_v13  ;;  %v3138_v62 = vpop.permute.xlu1 %3137  ;;  %v1624_v43 = vsel %vm1609_vm2, %v1591_v12, %v3124_v5  ;;  %v1625_v44 = vsel %vm1609_vm2, %v1592_v32, %v3125_v57 }
 0x176   : > { %v3133_v53 = vpop.permute.xlu0 %3132  ;;  %v3140_v39 = vunpack.i.h.bf16 %v3138_v62  ;;  %v3139_v45 = vunpack.i.l.bf16 %v3138_v62 }
 0x177   : > { %v3135_v48 = vunpack.i.h.bf16 %v3133_v53  ;;  %v3134_v15 = vunpack.i.l.bf16 %v3133_v53 }
 0x178   : > { %v1673_v11 = vsel %vm1642_vm3, %v1640_v35, %v3139_v45  ;;  %v1674_v50 = vsel %vm1642_vm3, %v1641_v21, %v3140_v39 }
 0x179   : > { %v3148_v16 = vpop.permute.xlu1 %3147  ;;  %v1657_v41 = vsel %vm1642_vm3, %v1624_v43, %v3134_v15  ;;  %v1658_v22 = vsel %vm1642_vm3, %v1625_v44, %v3135_v48 }
 0x17a   : > { %v3143_v34 = vpop.permute.xlu0 %3142  ;;  %v3150_v24 = vunpack.i.h.bf16 %v3148_v16  ;;  %v3149_v18 = vunpack.i.l.bf16 %v3148_v16 }
 0x17b   : > { %v3145_v7 = vunpack.i.h.bf16 %v3143_v34  ;;  %v3144_v28 = vunpack.i.l.bf16 %v3143_v34 }
 0x17c   : > { %v1706_v63 = vsel %vm1675_vm4, %v1673_v11, %v3149_v18  ;;  %v1707_v40 = vsel %vm1675_vm4, %v1674_v50, %v3150_v24 }
 0x17d   : > { %v3158_v10 = vpop.permute.xlu1 %3157  ;;  %v1690_v13 = vsel %vm1675_vm4, %v1657_v41, %v3144_v28  ;;  %v1691_v62 = vsel %vm1675_vm4, %v1658_v22, %v3145_v7 }
 0x17e   : > { %v3153_v4 = vpop.permute.xlu0 %3152  ;;  %v3160_v9 = vunpack.i.h.bf16 %v3158_v10  ;;  %v3159_v55 = vunpack.i.l.bf16 %v3158_v10 }
 0x17f   : > { %v3155_v19 = vunpack.i.h.bf16 %v3153_v4  ;;  %v3154_v3 = vunpack.i.l.bf16 %v3153_v4 }
 0x180   : > { %v1739_v53 = vsel %vm1708_vm5, %v1706_v63, %v3159_v55  ;;  %v1740_v37 = vsel %vm1708_vm5, %v1707_v40, %v3160_v9 }
 0x181   : > { %v3168_v52 = vpop.permute.xlu1 %3167  ;;  %v1723_v25 = vsel %vm1708_vm5, %v1690_v13, %v3154_v3  ;;  %v1724_v29 = vsel %vm1708_vm5, %v1691_v62, %v3155_v19 }
 0x182   : > { %v3163_v46 = vpop.permute.xlu0 %3162  ;;  %v3170_v56 = vunpack.i.h.bf16 %v3168_v52  ;;  %v3169_v61 = vunpack.i.l.bf16 %v3168_v52 }
 0x183   : > { %v3165_v0 = vunpack.i.h.bf16 %v3163_v46  ;;  %v3164_v6 = vunpack.i.l.bf16 %v3163_v46 }
 0x184   : > { %v1772_v47 = vsel %vm1741_vm6, %v1739_v53, %v3169_v61  ;;  %v1773_v33 = vsel %vm1741_vm6, %v1740_v37, %v3170_v56 }
 0x185   : > { %v3178_v38 = vpop.permute.xlu1 %3177  ;;  %v1756_v36 = vsel %vm1741_vm6, %v1723_v25, %v3164_v6  ;;  %v1757_v34 = vsel %vm1741_vm6, %v1724_v29, %v3165_v0 }
 0x186   : > { %v3180_v1 = vunpack.i.h.bf16 %v3178_v38  ;;  %v3179_v30 = vunpack.i.l.bf16 %v3178_v38  ;;  %v3173_v20 = vpop.permute.xlu0 %3172 }
 0x187   : > { %v3175_v16 = vunpack.i.h.bf16 %v3173_v20  ;;  %v3174_v31 = vunpack.i.l.bf16 %v3173_v20 }
 0x188   : > { %v1805_v14 = vsel %vm1774_vm7, %v1772_v47, %v3179_v30  ;;  %v1806_v26 = vsel %vm1774_vm7, %v1773_v33, %v3180_v1 }
 0x189   : > { %v1822_v49 = vpack.c.bf16 %v1806_v26, %v1805_v14  ;;  %v1789_v58 = vsel %vm1774_vm7, %v1756_v36, %v3174_v31  ;;  %v1790_v51 = vsel %vm1774_vm7, %v1757_v34, %v3175_v16 }
 0x18a   : > { %v1814_v42 = vpack.c.bf16 %v1790_v51, %v1789_v58 }
 0x18b   : > { %2505 = vmatprep.subr.msk.bf16.mxu0 %vm1837_vm8, %v1822_v49  ;;  %2506 = vmatprep.subr.msk.bf16.mxu1 %vm1837_vm8, %v1822_v49 }
 0x18c   : > { %v1866_v57 = vsel %vm1837_vm8, %v1814_v42, 0 }
 0x18d   : > { %2470 = vmatpush3.bf16.xpose.msra.mxu0 %v1866_v57  ;;  %2490 = vmatpush3.bf16.xpose.msra.mxu1 %v1866_v57 }
 0x194   : > { %2472 = vmatmul.mubr.msk.bf16.vlgmr.msra.gmra.mrb[0].mxu0 %vm1837_vm8, %v4002_v23  ;;  %2474 = vmatmul.mubr.msk.bf16.vlgmr.msra.gmra.mrb[0].mxu1 %vm1837_vm8, %v4021_v8 }
 0x267   : > { %v1926_v5 = vpop.f32.mrb[0].mxu0  ;;  %v1936_v27 = vpop.f32.mrb[0].mxu1 }
 0x268   : > { %v1928_v17 = vpop.f32.mrb[1].mxu0  ;;  %v1938_v59 = vpop.f32.mrb[1].mxu1 }
 0x269   : > { %v1930_v60 = vpop.f32.mrb[2].mxu0  ;;  %v1940_v12 = vpop.f32.mrb[2].mxu1 }
 0x26a   : > { %v1945_v32 = vadd.f32 %v1930_v60, %v1926_v5  ;;  %v1932_v10 = vpop.f32.mrb[3].mxu0  ;;  %v1942_v54 = vpop.f32.mrb[3].mxu1 }
 0x26b   : > { %v1954_v2 = vadd.f32 %v1932_v10, %v1928_v17 }
 0x26c   : > { %v1946_v39 = vadd.f32 %v1945_v32, %v1936_v27 }
 0x26d   : > { %v1955_v45 = vadd.f32 %v1954_v2, %v1938_v59 }
 0x26e   : > { %v1947_v4 = vadd.f32 %v1946_v39, %v1940_v12 }
 0x26f   : > { %v1956_v35 = vadd.f32 %v1955_v45, %v1942_v54 }
 0x270   : > { %v1948_v21 = vrot.slane %v1947_v4, 4 }
 0x271   : > { %v1957_v48 = vrot.slane %v1956_v35, 4 }
 0x272   : > { %v1949_v23 = vadd.f32 %v1948_v21, %v1947_v4 }
 0x273   : > { %v1958_v15 = vadd.f32 %v1957_v48, %v1956_v35 }
 0x274   : > { %v1950_v43 = vrot.slane %v1949_v23, 2 }
 0x275   : > { %v1959_v8 = vrot.slane %v1958_v15, 2 }
 0x276   : > { %v1951_v44 = vadd.f32 %v1950_v43, %v1949_v23 }
 0x277   : > { %v1960_v24 = vadd.f32 %v1959_v8, %v1958_v15 }
 0x278   : > { %v1952_v18 = vrot.slane %v1951_v44, 1 }
 0x279   : > { %v1961_v7 = vrot.slane %v1960_v24, 1 }
 0x27a   : > { %v1953_v28 = vadd.f32 %v1952_v18, %v1951_v44 }
 0x27b   : > { %v1962_v9 = vadd.f32 %v1961_v7, %v1960_v24 }
 0x27c   : > { %v1963_v55 = vmul.f32 0.03125, %v1953_v28 }
 0x27d   : > { %v1964_v52 = vmul.f32 0.03125, %v1962_v9 }
 0x27e   : > { %v1965_v11 = vsub.f32 %v1926_v5, %v1963_v55  ;;  %v1967_v50 = vsub.f32 %v1930_v60, %v1963_v55  ;;  %v1969_v19 = vsub.f32 %v1936_v27, %v1963_v55  ;;  %v1971_v3 = vsub.f32 %v1940_v12, %v1963_v55  ;;  %v2025_v5 = vpop.permute.xlu1 %2024 }
 0x27f   : > { %v1966_v46 = vsub.f32 %v1928_v17, %v1964_v52  ;;  %v1968_v41 = vsub.f32 %v1932_v10, %v1964_v52  ;;  %v1970_v22 = vsub.f32 %v1938_v59, %v1964_v52  ;;  %v1972_v56 = vsub.f32 %v1942_v54, %v1964_v52  ;;  %v2020_v59 = vpop.permute.xlu0 %2019 }
 0x280   : > { %v1973_v61 = vmul.f32 %v1965_v11, %v1965_v11  ;;  %v1975_v63 = vmul.f32 %v1967_v50, %v1967_v50  ;;  %v1977_v6 = vmul.f32 %v1969_v19, %v1969_v19  ;;  %v1979_v37 = vmul.f32 %v1971_v3, %v1971_v3 }
 0x281   : > { %v1974_v40 = vmul.f32 %v1966_v46, %v1966_v46  ;;  %v1976_v0 = vmul.f32 %v1968_v41, %v1968_v41  ;;  %v1978_v62 = vmul.f32 %v1970_v22, %v1970_v22  ;;  %v1980_v25 = vmul.f32 %v1972_v56, %v1972_v56 }
 0x282   : > { %v1981_v13 = vadd.f32 %v1975_v63, %v1973_v61  ;;  %v2030_v60 = vpop.permute.xlu1 %2029 }
 0x283   : > { %v1990_v53 = vadd.f32 %v1976_v0, %v1974_v40  ;;  %v2035_v12 = vpop.permute.xlu0 %2034 }
 0x284   : > { %v1982_v38 = vadd.f32 %v1981_v13, %v1977_v6 }
 0x285   : > { %v1991_v29 = vadd.f32 %v1990_v53, %v1978_v62 }
 0x286   : > { %v1983_v1 = vadd.f32 %v1982_v38, %v1979_v37  ;;  %v2052_v32 = vpop.permute.xlu1 %2051 }
 0x287   : > { %v1992_v30 = vadd.f32 %v1991_v29, %v1980_v25  ;;  %v2057_v15 = vpop.permute.xlu0 %2056 }
 0x288   : > { %v1984_v20 = vrot.slane %v1983_v1, 4 }
 0x289   : > { %v1993_v47 = vrot.slane %v1992_v30, 4 }
 0x28a   : > { %v1985_v33 = vadd.f32 %v1984_v20, %v1983_v1 }
 0x28b   : > { %v1994_v16 = vadd.f32 %v1993_v47, %v1992_v30  ;;  %v2067_v63 = vpop.permute.xlu0 %2066 }
 0x28c   : > { %v1986_v31 = vrot.slane %v1985_v33, 2 }
 0x28d   : > { %v1995_v36 = vrot.slane %v1994_v16, 2 }
 0x28e   : > { %v1987_v34 = vadd.f32 %v1986_v31, %v1985_v33 }
 0x28f   : > { %v1996_v14 = vadd.f32 %v1995_v36, %v1994_v16 }
 0x290   : > { %v1988_v26 = vrot.slane %v1987_v34, 1 }
 0x291   : > { %v1997_v49 = vrot.slane %v1996_v14, 1 }
 0x292   : > { %v1989_v58 = vadd.f32 %v1988_v26, %v1987_v34 }
 0x293   : > { %v1998_v51 = vadd.f32 %v1997_v49, %v1996_v14 }
 0x294   : > { %v1999_v42 = vmul.f32 0.03125, %v1989_v58 }
 0x295   : > { %v2000_v57 = vmul.f32 0.03125, %v1998_v51 }
 0x296   : > { %v2001_v27 = vadd.f32 1e-06, %v1999_v42 }
 0x297   : > { %v2002_v17 = vadd.f32 1e-06, %v2000_v57 }
 0x298   : > { %3185 = vrsqrt.f32 %v2001_v27 }
 0x299   : > { %3187 = vrsqrt.f32 %v2002_v17 }
 0x2a2   : > { %v3186_v10 = vpop.eup %3185 }
 0x2a3   : > { %v3188_v54 = vpop.eup %3187  ;;  %v2007_v2 = vmul.f32 %v3186_v10, %v1967_v50  ;;  %v2005_v39 = vmul.f32 %v3186_v10, %v1965_v11  ;;  %v2009_v45 = vmul.f32 %v3186_v10, %v1969_v19  ;;  %v2011_v4 = vmul.f32 %v3186_v10, %v1971_v3  ;;  %v2062_v50 = vpop.permute.xlu1 %2061 }
 0x2a4   : > { %v2012_v35 = vmul.f32 %v3188_v54, %v1972_v56  ;;  %v2008_v21 = vmul.f32 %v3188_v54, %v1968_v41  ;;  %v2006_v48 = vmul.f32 %v3188_v54, %v1966_v46  ;;  %v2010_v23 = vmul.f32 %v3188_v54, %v1970_v22 }
 0x2a5   : > { %v2039_v43 = vmul.f32 %v2025_v5, %v2007_v2  ;;  %v2037_v8 = vmul.f32 %v2020_v59, %v2005_v39  ;;  %v2041_v44 = vmul.f32 %v2030_v60, %v2009_v45  ;;  %v2043_v28 = vmul.f32 %v2035_v12, %v2011_v4 }
 0x2a6   : > { %v2040_v24 = vmul.f32 %v2025_v5, %v2008_v21  ;;  %v2038_v18 = vmul.f32 %v2020_v59, %v2006_v48  ;;  %v2042_v7 = vmul.f32 %v2030_v60, %v2010_v23  ;;  %v2044_v9 = vmul.f32 %v2035_v12, %v2012_v35 }
 0x2a7   : > { %v2069_v55 = vadd.f32 %v2052_v32, %v2037_v8  ;;  %v4290_v52 = vadd.f32 %v2057_v15, %v2039_v43  ;;  %v4294_v3 = vadd.f32 %v2062_v50, %v2041_v44  ;;  %v4301_v6 = vadd.f32 %v2067_v63, %v2043_v28 }
 0x2a8   : > { %v2070_v11 = vadd.f32 %v2052_v32, %v2038_v18  ;;  %v4292_v19 = vadd.f32 %v2057_v15, %v2040_v24  ;;  %v4296_v46 = vadd.f32 %v2062_v50, %v2042_v7  ;;  %v4303_v13 = vadd.f32 %v2067_v63, %v2044_v9 }
 0x2a9   : > { %v2085_v41 = vmul.f32 0.044715, %v2069_v55  ;;  %v2087_v22 = vmul.f32 0.044715, %v4290_v52  ;;  %v2089_v37 = vmul.f32 0.044715, %v4294_v3 }
 0x2aa   : > { %v2086_v56 = vmul.f32 0.044715, %v2070_v11  ;;  %v2088_v61 = vmul.f32 0.044715, %v4292_v19  ;;  %v2090_v38 = vmul.f32 0.044715, %v4296_v46 }
 0x2ab   : > { %v2093_v40 = vmul.f32 %v2085_v41, %v2069_v55  ;;  %v2095_v0 = vmul.f32 %v2087_v22, %v4290_v52  ;;  %v2097_v20 = vmul.f32 %v2089_v37, %v4294_v3  ;;  %v2091_v31 = vmul.f32 0.044715, %v4301_v6 }
 0x2ac   : > { %v2094_v62 = vmul.f32 %v2086_v56, %v2070_v11  ;;  %v2096_v53 = vmul.f32 %v2088_v61, %v4292_v19  ;;  %v2098_v47 = vmul.f32 %v2090_v38, %v4296_v46  ;;  %v2092_v36 = vmul.f32 0.044715, %v4303_v13 }
 0x2ad   : > { %v2101_v25 = vmul.f32 %v2093_v40, %v2069_v55  ;;  %v2103_v29 = vmul.f32 %v2095_v0, %v4290_v52  ;;  %v2105_v26 = vmul.f32 %v2097_v20, %v4294_v3  ;;  %v2099_v42 = vmul.f32 %v2091_v31, %v4301_v6 }
 0x2ae   : > { %v2102_v1 = vmul.f32 %v2094_v62, %v2070_v11  ;;  %v2104_v30 = vmul.f32 %v2096_v53, %v4292_v19  ;;  %v2106_v49 = vmul.f32 %v2098_v47, %v4296_v46  ;;  %v2100_v57 = vmul.f32 %v2092_v36, %v4303_v13 }
 0x2af   : > { %v2109_v33 = vadd.f32 %v2101_v25, %v2069_v55  ;;  %v2111_v16 = vadd.f32 %v2103_v29, %v4290_v52  ;;  %v2113_v17 = vadd.f32 %v2105_v26, %v4294_v3  ;;  %v2107_v60 = vmul.f32 %v2099_v42, %v4301_v6 }
 0x2b0   : > { %v2110_v34 = vadd.f32 %v2102_v1, %v2070_v11  ;;  %v2112_v14 = vadd.f32 %v2104_v30, %v4292_v19  ;;  %v2114_v59 = vadd.f32 %v2106_v49, %v4296_v46  ;;  %v2108_v12 = vmul.f32 %v2100_v57, %v4303_v13 }
 0x2b1   : > { %v2117_v58 = vmul.f32 0.7978846, %v2109_v33  ;;  %v2119_v51 = vmul.f32 0.7978846, %v2111_v16  ;;  %v2121_v32 = vmul.f32 0.7978846, %v2113_v17  ;;  %v2115_v54 = vadd.f32 %v2107_v60, %v4301_v6 }
 0x2b2   : > { %v2118_v5 = vmul.f32 0.7978846, %v2110_v34  ;;  %v2120_v27 = vmul.f32 0.7978846, %v2112_v14  ;;  %v2122_v10 = vmul.f32 0.7978846, %v2114_v59  ;;  %v2116_v2 = vadd.f32 %v2108_v12, %v4303_v13 }
 0x2b3   : > { %3189 = vtanh.f32 %v2117_v58  ;;  %v2123_v39 = vmul.f32 0.7978846, %v2115_v54  ;;  %v2077_v21 = vmul.f32 0.5, %v2069_v55  ;;  %v2078_v15 = vmul.f32 0.5, %v2070_v11 }
 0x2b4   : > { %3191 = vtanh.f32 %v2118_v5  ;;  %v2124_v45 = vmul.f32 0.7978846, %v2116_v2  ;;  %v2079_v24 = vmul.f32 0.5, %v4290_v52  ;;  %v2080_v9 = vmul.f32 0.5, %v4292_v19 }
 0x2b5   : > { %3193 = vtanh.f32 %v2119_v51  ;;  %v2081_v22 = vmul.f32 0.5, %v4294_v3  ;;  %v2082_v52 = vmul.f32 0.5, %v4296_v46  ;;  %v2083_v0 = vmul.f32 0.5, %v4301_v6 }
 0x2b6   : > { %3195 = vtanh.f32 %v2120_v27  ;;  %v2084_v3 = vmul.f32 0.5, %v4303_v13 }
 0x2b7   : > { %3197 = vtanh.f32 %v2121_v32 }
 0x2b8   : > { %3199 = vtanh.f32 %v2122_v10 }
 0x2b9   : > { %3201 = vtanh.f32 %v2123_v39 }
 0x2ba   : > { %3203 = vtanh.f32 %v2124_v45 }
 0x2bd   : > { %v3190_v4 = vpop.eup %3189 }
 0x2be   : > { %v3192_v35 = vpop.eup %3191  ;;  %v2133_v48 = vadd.f32 1.0, %v3190_v4 }
 0x2bf   : > { %v3194_v23 = vpop.eup %3193  ;;  %v2134_v43 = vadd.f32 1.0, %v3192_v35 }
 0x2c0   : > { %v3196_v8 = vpop.eup %3195  ;;  %v2141_v44 = vmul.f32 %v2133_v48, %v2077_v21  ;;  %v2135_v18 = vadd.f32 1.0, %v3194_v23 }
 0x2c1   : > { %v3198_v7 = vpop.eup %3197  ;;  %v2142_v28 = vmul.f32 %v2134_v43, %v2078_v15  ;;  %v2136_v55 = vadd.f32 1.0, %v3196_v8 }
 0x2c2   : > { %v3200_v50 = vpop.eup %3199  ;;  %2149 = vst [vmem:[%s4330_s6] sm:$0xff] %v2141_v44  ;;  %v2143_v41 = vmul.f32 %v2135_v18, %v2079_v24  ;;  %v2137_v11 = vadd.f32 1.0, %v3198_v7 }
 0x2c3   : > { %v3202_v56 = vpop.eup %3201  ;;  %2150 = vst [vmem:[%s4330_s6 + $0x8] sm:$0xff] %v2142_v28  ;;  %v2144_v61 = vmul.f32 %v2136_v55, %v2080_v9  ;;  %v2138_v63 = vadd.f32 1.0, %v3200_v50 }
 0x2c4   : > { %v3204_v40 = vpop.eup %3203  ;;  %2151 = vst [vmem:[%s4330_s6 + $0x10] sm:$0xff] %v2143_v41  ;;  %v2145_v19 = vmul.f32 %v2137_v11, %v2081_v22  ;;  %v2139_v62 = vadd.f32 1.0, %v3202_v56 }
 0x2c5   : > { %2152 = vst [vmem:[%s4330_s6 + $0x18] sm:$0xff] %v2144_v61  ;;  %v2146_v53 = vmul.f32 %v2138_v63, %v2082_v52  ;;  %v2140_v37 = vadd.f32 1.0, %v3204_v40 }
 0x2c6   : > { %2153 = vst [vmem:[%s4330_s6 + $0x20] sm:$0xff] %v2145_v19  ;;  %v2147_v38 = vmul.f32 %v2139_v62, %v2083_v0 }
 0x2c7   : > { %2154 = vst [vmem:[%s4330_s6 + $0x28] sm:$0xff] %v2146_v53  ;;  %v2148_v25 = vmul.f32 %v2140_v37, %v2084_v3 }
 0x2c8   : > { %2155 = vst [vmem:[%s4330_s6 + $0x30] sm:$0xff] %v2147_v38 }
 0x2c9   : > { %2156 = vst [vmem:[%s4330_s6 + $0x38] sm:$0xff] %v2148_v25 }
 0x2ca PF: > { %s14_s17 = sadd.s32 1, %s3243_s17   ;;  %s4400_s15 = smov %s3239_s16 }
 0x2cb   : > { %p11_p5 = scmp.ge.s32.totalorder %s14_s17, 4   ;;  %s4401_s16 = smov %s4403_s18 }
 0x2cd   :  { %13 = sbr.rel (!%p11_p5) target bundleno = 2 (0x2), region = 69 }

</bundles_post_ra>
